<compile_context>
chip_gen: v6e
topology: v6e:2x2x1
jax: 0.10.0
libtpu: 0.0.40
codegen_flags: <defaults>
</compile_context>

<pallas_src>
import functools

import jax
import jax.numpy as jnp
from jax.experimental import pallas as pl
from jax.experimental.pallas import tpu as pltpu


def _round_up(v, m):
    return (v + m - 1) // m * m


def _pad_to(a, shape):
    pads = [(0, t - s) for s, t in zip(a.shape, shape)]
    if all(p == (0, 0) for p in pads):
        return a
    return jnp.pad(a, pads)


def _spatial_ocr_kernel(x_ref, k_ref, v_ref,
                        wq1_ref, wq2_ref, wu_ref, wo_ctx_ref, wo_x_ref,
                        bias_ref, out_ref, *, kp, cp, op, mp):
    f32, bf16 = jnp.float32, jnp.bfloat16

    # Packed bias/mask row: [bq1(Kp) | bq2(Kp) | bu(Cp) | bo(Op) | mask(Mp)];
    # all offsets are multiples of 128 so these are lane-aligned static slices.
    o = 0
    bq1 = bias_ref[:, o:o + kp]; o += kp
    bq2 = bias_ref[:, o:o + kp]; o += kp
    bu = bias_ref[:, o:o + cp]; o += cp
    bo = bias_ref[:, o:o + op]; o += op
    mask = bias_ref[:, o:o + mp]                                           # (1, Mp) {0, -1e30}

    x = x_ref[0]                                                           # (T, Cp) bf16

    # ---- f_pixel (query): conv1x1+BN+ReLU x2 (attention scale pre-folded into wq2/bq2) ----
    q = jnp.maximum(jnp.dot(x, wq1_ref[...], preferred_element_type=f32) + bq1, 0.0)
    q = jnp.maximum(jnp.dot(q.astype(bf16), wq2_ref[...], preferred_element_type=f32) + bq2, 0.0)

    # ---- attention over proxy positions: contract Kc axis directly (no k.T materialized) ----
    sim = jax.lax.dot_general(q.astype(bf16), k_ref[0],
                              dimension_numbers=(((1,), (1,)), ((), ())),
                              preferred_element_type=f32)                  # (T, Mp)
    sim = sim + mask                                                       # mask padded proxies
    sim = sim - jnp.max(sim, axis=-1, keepdims=True)
    e = jnp.exp(sim)
    attn = e * pl.reciprocal(jnp.sum(e, axis=-1, keepdims=True), approx=True)

    ctx = jnp.dot(attn.astype(bf16), v_ref[0], preferred_element_type=f32)  # (T, Kp)

    # ---- f_up: conv1x1+BN+ReLU back to in_channels ----
    ctx = jnp.maximum(jnp.dot(ctx.astype(bf16), wu_ref[...], preferred_element_type=f32) + bu, 0.0)

    # ---- conv_bn_dropout on cat([context, feats]) -> split matmul; Dropout2d(eval) = identity ----
    out = (jnp.dot(ctx.astype(bf16), wo_ctx_ref[...], preferred_element_type=f32)
           + jnp.dot(x, wo_x_ref[...], preferred_element_type=f32)
           + bo)
    out_ref[0] = jnp.maximum(out, 0.0).astype(out_ref.dtype)


def _tpu_vmem_capacity_bytes():
    try:
        info = pltpu.get_tpu_info()
        cap = getattr(info, "vmem_capacity_bytes", None)
        if cap:
            return int(cap)
    except Exception:
        pass
    return 64 * 1024 * 1024   # conservative default (v7x per-TC)


def spatial_ocr_tokens(x, p, params, *, tile_hw=None):
    """Token-major entry point (preferred: no NCHW<->NHWC layout plumbing).

    x: (B, HW, C) pixel features; p: (B, M, C) object-region features.
    Returns (B, HW, Cout) bf16.
    """
    B, HW, C = x.shape
    _, M, _ = p.shape
    Kc = params["wq1"].shape[1]
    Cout = params["wo_ctx"].shape[1]
    f32, bf16 = jnp.float32, jnp.bfloat16

    # ---- proxy-side projections (f_object, f_down): tiny (M rows), done outside the
    # kernel so both grid axes stay "parallel"; wk1 and wv share the same input and are
    # fused into a single matmul.
    wkv1 = jnp.concatenate([params["wk1"], params["wv"]], axis=1).astype(bf16)   # (C, 2Kc)
    bkv1 = jnp.concatenate([params["bk1"], params["bv"]], axis=1).astype(f32)    # (1, 2Kc)
    kv1 = jnp.maximum(
        jnp.einsum("bmc,ck->bmk", p.astype(bf16), wkv1, preferred_element_type=f32) + bkv1, 0.0)
    k = jnp.maximum(
        jnp.einsum("bmk,kj->bmj", kv1[..., :Kc].astype(bf16), params["wk2"].astype(bf16),
                   preferred_element_type=f32) + params["bk2"].astype(f32), 0.0)
    v = kv1[..., Kc:]

    # Fold attention scale into the second f_pixel conv (relu(s*z) == s*relu(z), s > 0).
    scale = float(Kc) ** -0.5
    wq2 = params["wq2"] * scale
    bq2 = params["bq2"] * scale

    # ---- pad channel dims and proxy count to lane multiples (128): dense vregs, clean MXU.
    Cp, Kp, Op = _round_up(C, 128), _round_up(Kc, 128), _round_up(Cout, 128)
    Mp = _round_up(M, 128)

    # ---- per-generation spatial tile size & explicit VMEM budget.
    HWp = _round_up(HW, 8)
    vmem_cap = _tpu_vmem_capacity_bytes()
    if tile_hw is None:
        tile_hw = 2048 if vmem_cap >= 100 * 1024 * 1024 else 1024    # v5e/v6e vs v7x
    vmem_limit = min(vmem_cap * 3 // 4, 100 * 1024 * 1024)

    weight_bytes = 2 * (Cp * Kp + Kp * Kp + Kp * Cp + 2 * Cp * Op) \
        + 4 * (2 * Kp + Cp + Op + Mp)

    def vmem_estimate(t):
        stream = 2 * t * Cp * 2 + 2 * t * Op * 2            # double-buffered bf16 in/out tiles
        resident = 2 * (2 * Mp * Kp * 2 + weight_bytes)     # k, v, weights/bias (x2 buffers)
        interm = 6 * t * max(Kp, Op, Mp) * 4                # f32 temporaries (q/sim/ctx/out)
        return stream + resident + interm

    T = min(tile_hw, HWp)
    while T > 128 and vmem_estimate(T) > vmem_limit:
        T = _round_up(T // 2, 8)
    HWp = _round_up(HWp, T)
    n_tiles = HWp // T

    # ---- pad operands.
    x_p = _pad_to(x.astype(bf16), (B, HWp, Cp))
    k_p = _pad_to(k.astype(bf16), (B, Mp, Kp))
    v_p = _pad_to(v.astype(bf16), (B, Mp, Kp))

    def wpad(w, r, c):
        return _pad_to(w.astype(bf16), (r, c))

    def bpad(b, c):
        return _pad_to(b.astype(f32).reshape(1, -1), (1, c))

    wq1_p = wpad(params["wq1"], Cp, Kp)
    wq2_p = wpad(wq2, Kp, Kp)
    wu_p = wpad(params["wu"], Kp, Cp)
    wo_ctx_p = wpad(params["wo_ctx"], Cp, Op)
    wo_x_p = wpad(params["wo_x"], Cp, Op)

    # Packed biases + additive proxy-column mask (padded k rows are zero, but the mask is
    # still required so padded columns get ~0 softmax weight).
    mask = jnp.where(jnp.arange(Mp) < M, 0.0, -1e30).astype(f32).reshape(1, Mp)
    bias = jnp.concatenate(
        [bpad(params["bq1"], Kp), bpad(bq2, Kp), bpad(params["bu"], Cp),
         bpad(params["bo"], Op), mask], axis=1)                            # (1, 2Kp+Cp+Op+Mp)

    def const_spec(shape):
        return pl.BlockSpec(shape, lambda b, t, _n=len(shape): (0,) * _n)

    flops = 2 * B * HWp * (Cp * Kp + Kp * Kp + 2 * Mp * Kp + Kp * Cp + 2 * Cp * Op)
    bytes_accessed = (x_p.size * 2 + (k_p.size + v_p.size) * 2
                      + B * HWp * Op * 2 + weight_bytes)
    cost = pl.CostEstimate(flops=int(flops), transcendentals=int(B * HWp * Mp),
                           bytes_accessed=int(bytes_accessed))

    kernel = functools.partial(_spatial_ocr_kernel, kp=Kp, cp=Cp, op=Op, mp=Mp)

    out = pl.pallas_call(
        kernel,
        out_shape=jax.ShapeDtypeStruct((B, HWp, Op), bf16),
        grid=(B, n_tiles),
        in_specs=[
            pl.BlockSpec((1, T, Cp), lambda b, t: (b, t, 0)),    # feats tile (streamed)
            pl.BlockSpec((1, Mp, Kp), lambda b, t: (b, 0, 0)),   # key   (per-batch resident)
            pl.BlockSpec((1, Mp, Kp), lambda b, t: (b, 0, 0)),   # value (per-batch resident)
            const_spec(wq1_p.shape), const_spec(wq2_p.shape), const_spec(wu_p.shape),
            const_spec(wo_ctx_p.shape), const_spec(wo_x_p.shape), const_spec(bias.shape),
        ],
        out_specs=pl.BlockSpec((1, T, Op), lambda b, t: (b, t, 0)),
        compiler_params=pltpu.CompilerParams(
            dimension_semantics=("parallel", "parallel"),
            vmem_limit_bytes=int(max(vmem_limit, 32 * 1024 * 1024)),
        ),
        cost_estimate=cost,
    )(x_p, k_p, v_p, wq1_p, wq2_p, wu_p, wo_ctx_p, wo_x_p, bias)

    return out[:, :HW, :Cout]


def spatial_ocr_module(feats_nchw, proxy_nchw, params, *, tile_hw=None):
    """NCHW wrapper matching the PyTorch module interface. Returns (B, Cout, H, W) bf16."""
    B, C, H, W = feats_nchw.shape
    _, _, Hp, Wp = proxy_nchw.shape
    # TODO(synk): keep NHWC/token-major end-to-end (call spatial_ocr_tokens directly)
    # to drop these pure-bandwidth layout transposes.
    x = jnp.transpose(feats_nchw, (0, 2, 3, 1)).reshape(B, H * W, C)
    p = jnp.transpose(proxy_nchw, (0, 2, 3, 1)).reshape(B, Hp * Wp, C)
    out = spatial_ocr_tokens(x, p, params, tile_hw=tile_hw)
    Cout = out.shape[-1]
    return out.reshape(B, H, W, Cout).transpose(0, 3, 1, 2)


def init_params(in_channels, key_channels, out_channels, seed=0):
    """Deterministic synthetic parameters (conv1x1 with BN(eval) folded in)."""
    key = jax.random.PRNGKey(seed)
    ks = jax.random.split(key, 16)

    def w(k, shape, s=0.2):
        return (s * jax.random.normal(k, shape)).astype(jnp.float32)

    C, Kc, Co = in_channels, key_channels, out_channels
    return {
        "wq1": w(ks[0], (C, Kc)),  "bq1": w(ks[1], (1, Kc), 0.05),
        "wq2": w(ks[2], (Kc, Kc)), "bq2": w(ks[3], (1, Kc), 0.05),
        "wk1": w(ks[4], (C, Kc)),  "bk1": w(ks[5], (1, Kc), 0.05),
        "wk2": w(ks[6], (Kc, Kc)), "bk2": w(ks[7], (1, Kc), 0.05),
        "wv":  w(ks[8], (C, Kc)),  "bv":  w(ks[9], (1, Kc), 0.05),
        "wu":  w(ks[10], (Kc, C)), "bu":  w(ks[11], (1, C), 0.05),
        # final conv over concat([context, feats]), split into the two C-halves
        "wo_ctx": w(ks[12], (C, Co)),
        "wo_x":   w(ks[13], (C, Co)),
        "bo":     w(ks[14], (1, Co), 0.05),
    }


if __name__ == "__main__":
    B, C, H, W = 2, 4, 16, 16          # feats: N x C x H x W
    Kc, Cout = 4, 4
    M = 8                              # proxy / object regions: N x C x M x 1

    key = jax.random.PRNGKey(0)
    kf, kp = jax.random.split(key)
    feats = jax.random.normal(kf, (B, C, H, W), dtype=jnp.float32)
    proxy = jax.random.normal(kp, (B, C, M, 1), dtype=jnp.float32)

    params = init_params(C, Kc, Cout, seed=0)

    out = spatial_ocr_module(feats, proxy, params)
    jax.block_until_ready(out)
    assert out.shape == (B, Cout, H, W), out.shape
    assert bool(jnp.all(jnp.isfinite(out.astype(jnp.float32))))
    print("KERNEL_OK")
</pallas_src>

<mosaic_0001>
module attributes {stable_mosaic.version = 11 : i64} {
  func.func @_spatial_ocr_kernel(%arg0: i32, %arg1: i32, %arg2: memref<1x256x128xbf16, #tpu.memory_space<vmem>>, %arg3: memref<1x128x128xbf16, #tpu.memory_space<vmem>>, %arg4: memref<1x128x128xbf16, #tpu.memory_space<vmem>>, %arg5: memref<128x128xbf16, #tpu.memory_space<vmem>>, %arg6: memref<128x128xbf16, #tpu.memory_space<vmem>>, %arg7: memref<128x128xbf16, #tpu.memory_space<vmem>>, %arg8: memref<128x128xbf16, #tpu.memory_space<vmem>>, %arg9: memref<128x128xbf16, #tpu.memory_space<vmem>>, %arg10: memref<1x640xf32, #tpu.memory_space<vmem>>, %arg11: memref<1x256x128xbf16, #tpu.memory_space<vmem>>) attributes {dimension_semantics = [#tpu.dimension_semantics<parallel>, #tpu.dimension_semantics<parallel>], iteration_bounds = array<i64: 2, 1>, scalar_prefetch = 0 : i64, scratch_operands = 0 : i64, tpu.core_type = #tpu.core_type<tc>, window_params = [{transform_indices = @transform_0, window_bounds = array<i64: 1, 256, 128>}, {transform_indices = @transform_1, window_bounds = array<i64: 1, 128, 128>}, {transform_indices = @transform_2, window_bounds = array<i64: 1, 128, 128>}, {pipeline_mode = #tpu.pipeline_mode<synchronous>, transform_indices = @transform_3, window_bounds = array<i64: 128, 128>}, {pipeline_mode = #tpu.pipeline_mode<synchronous>, transform_indices = @transform_4, window_bounds = array<i64: 128, 128>}, {pipeline_mode = #tpu.pipeline_mode<synchronous>, transform_indices = @transform_5, window_bounds = array<i64: 128, 128>}, {pipeline_mode = #tpu.pipeline_mode<synchronous>, transform_indices = @transform_6, window_bounds = array<i64: 128, 128>}, {pipeline_mode = #tpu.pipeline_mode<synchronous>, transform_indices = @transform_7, window_bounds = array<i64: 128, 128>}, {pipeline_mode = #tpu.pipeline_mode<synchronous>, transform_indices = @transform_8, window_bounds = array<i64: 1, 640>}, {transform_indices = @transform_9, window_bounds = array<i64: 1, 256, 128>}]} {
    %c0 = arith.constant 0 : index
    %c0_0 = arith.constant 0 : index
    %0 = vector.load %arg10[%c0, %c0_0] : memref<1x640xf32, #tpu.memory_space<vmem>>, vector<1x128xf32>
    %c0_1 = arith.constant 0 : index
    %c128 = arith.constant 128 : index
    %1 = vector.load %arg10[%c0_1, %c128] : memref<1x640xf32, #tpu.memory_space<vmem>>, vector<1x128xf32>
    %c0_2 = arith.constant 0 : index
    %c256 = arith.constant 256 : index
    %2 = vector.load %arg10[%c0_2, %c256] : memref<1x640xf32, #tpu.memory_space<vmem>>, vector<1x128xf32>
    %c0_3 = arith.constant 0 : index
    %c384 = arith.constant 384 : index
    %3 = vector.load %arg10[%c0_3, %c384] : memref<1x640xf32, #tpu.memory_space<vmem>>, vector<1x128xf32>
    %c0_4 = arith.constant 0 : index
    %c512 = arith.constant 512 : index
    %4 = vector.load %arg10[%c0_4, %c512] : memref<1x640xf32, #tpu.memory_space<vmem>>, vector<1x128xf32>
    %c0_5 = arith.constant 0 : index
    %c0_6 = arith.constant 0 : index
    %c0_7 = arith.constant 0 : index
    %5 = vector.load %arg2[%c0_5, %c0_6, %c0_7] : memref<1x256x128xbf16, #tpu.memory_space<vmem>>, vector<1x256x128xbf16>
    %6 = vector.shape_cast %5 : vector<1x256x128xbf16> to vector<256x128xbf16>
    %c0_8 = arith.constant 0 : index
    %c0_9 = arith.constant 0 : index
    %7 = vector.load %arg5[%c0_8, %c0_9] : memref<128x128xbf16, #tpu.memory_space<vmem>>, vector<128x128xbf16>
    %cst = arith.constant dense<0.000000e+00> : vector<256x128xf32>
    %8 = tpu.matmul %6, %7, %cst {dimension_numbers = #tpu.dot_dimension_numbers<[1], [0], [0], [1], [0, 0, 1, 1], [], []>} : vector<256x128xbf16>, vector<128x128xbf16>, vector<256x128xf32> -> vector<256x128xf32>
    %9 = vector.broadcast %0 : vector<1x128xf32> to vector<256x128xf32>
    %10 = arith.addf %8, %9 : vector<256x128xf32>
    %cst_10 = arith.constant 0.000000e+00 : f32
    %11 = vector.broadcast %cst_10 : f32 to vector<256x128xf32>
    %12 = arith.maximumf %10, %11 : vector<256x128xf32>
    %13 = arith.truncf %12 : vector<256x128xf32> to vector<256x128xbf16>
    %c0_11 = arith.constant 0 : index
    %c0_12 = arith.constant 0 : index
    %14 = vector.load %arg6[%c0_11, %c0_12] : memref<128x128xbf16, #tpu.memory_space<vmem>>, vector<128x128xbf16>
    %cst_13 = arith.constant dense<0.000000e+00> : vector<256x128xf32>
    %15 = tpu.matmul %13, %14, %cst_13 {dimension_numbers = #tpu.dot_dimension_numbers<[1], [0], [0], [1], [0, 0, 1, 1], [], []>} : vector<256x128xbf16>, vector<128x128xbf16>, vector<256x128xf32> -> vector<256x128xf32>
    %16 = vector.broadcast %1 : vector<1x128xf32> to vector<256x128xf32>
    %17 = arith.addf %15, %16 : vector<256x128xf32>
    %cst_14 = arith.constant 0.000000e+00 : f32
    %18 = vector.broadcast %cst_14 : f32 to vector<256x128xf32>
    %19 = arith.maximumf %17, %18 : vector<256x128xf32>
    %20 = arith.truncf %19 : vector<256x128xf32> to vector<256x128xbf16>
    %c0_15 = arith.constant 0 : index
    %c0_16 = arith.constant 0 : index
    %c0_17 = arith.constant 0 : index
    %21 = vector.load %arg3[%c0_15, %c0_16, %c0_17] : memref<1x128x128xbf16, #tpu.memory_space<vmem>>, vector<1x128x128xbf16>
    %22 = vector.shape_cast %21 : vector<1x128x128xbf16> to vector<128x128xbf16>
    %cst_18 = arith.constant dense<0.000000e+00> : vector<256x128xf32>
    %23 = tpu.matmul %20, %22, %cst_18 {dimension_numbers = #tpu.dot_dimension_numbers<[1], [1], [0], [0], [0, 0, 1, 0], [], []>} : vector<256x128xbf16>, vector<128x128xbf16>, vector<256x128xf32> -> vector<256x128xf32>
    %24 = vector.broadcast %4 : vector<1x128xf32> to vector<256x128xf32>
    %25 = arith.addf %23, %24 : vector<256x128xf32>
    %cst_19 = arith.constant dense<0xFF800000> : vector<256xf32>
    %26 = vector.multi_reduction <maximumf>, %25, %cst_19 [1] : vector<256x128xf32> to vector<256xf32>
    %27 = vector.shape_cast %26 : vector<256xf32> to vector<256x1xf32>
    %28 = vector.broadcast %27 : vector<256x1xf32> to vector<256x128xf32>
    %29 = arith.subf %25, %28 : vector<256x128xf32>
    %30 = math.exp %29 : vector<256x128xf32>
    %cst_20 = arith.constant dense<0.000000e+00> : vector<256xf32>
    %31 = vector.multi_reduction <add>, %30, %cst_20 [1] : vector<256x128xf32> to vector<256xf32>
    %32 = vector.shape_cast %31 : vector<256xf32> to vector<256x1xf32>
    %33 = tpu.reciprocal %32 {approx = true} : vector<256x1xf32> -> vector<256x1xf32>
    %34 = vector.broadcast %33 : vector<256x1xf32> to vector<256x128xf32>
    %35 = arith.mulf %30, %34 : vector<256x128xf32>
    %36 = arith.truncf %35 : vector<256x128xf32> to vector<256x128xbf16>
    %c0_21 = arith.constant 0 : index
    %c0_22 = arith.constant 0 : index
    %c0_23 = arith.constant 0 : index
    %37 = vector.load %arg4[%c0_21, %c0_22, %c0_23] : memref<1x128x128xbf16, #tpu.memory_space<vmem>>, vector<1x128x128xbf16>
    %38 = vector.shape_cast %37 : vector<1x128x128xbf16> to vector<128x128xbf16>
    %cst_24 = arith.constant dense<0.000000e+00> : vector<256x128xf32>
    %39 = tpu.matmul %36, %38, %cst_24 {dimension_numbers = #tpu.dot_dimension_numbers<[1], [0], [0], [1], [0, 0, 1, 1], [], []>} : vector<256x128xbf16>, vector<128x128xbf16>, vector<256x128xf32> -> vector<256x128xf32>
    %40 = arith.truncf %39 : vector<256x128xf32> to vector<256x128xbf16>
    %c0_25 = arith.constant 0 : index
    %c0_26 = arith.constant 0 : index
    %41 = vector.load %arg7[%c0_25, %c0_26] : memref<128x128xbf16, #tpu.memory_space<vmem>>, vector<128x128xbf16>
    %cst_27 = arith.constant dense<0.000000e+00> : vector<256x128xf32>
    %42 = tpu.matmul %40, %41, %cst_27 {dimension_numbers = #tpu.dot_dimension_numbers<[1], [0], [0], [1], [0, 0, 1, 1], [], []>} : vector<256x128xbf16>, vector<128x128xbf16>, vector<256x128xf32> -> vector<256x128xf32>
    %43 = vector.broadcast %2 : vector<1x128xf32> to vector<256x128xf32>
    %44 = arith.addf %42, %43 : vector<256x128xf32>
    %cst_28 = arith.constant 0.000000e+00 : f32
    %45 = vector.broadcast %cst_28 : f32 to vector<256x128xf32>
    %46 = arith.maximumf %44, %45 : vector<256x128xf32>
    %47 = arith.truncf %46 : vector<256x128xf32> to vector<256x128xbf16>
    %c0_29 = arith.constant 0 : index
    %c0_30 = arith.constant 0 : index
    %48 = vector.load %arg8[%c0_29, %c0_30] : memref<128x128xbf16, #tpu.memory_space<vmem>>, vector<128x128xbf16>
    %cst_31 = arith.constant dense<0.000000e+00> : vector<256x128xf32>
    %49 = tpu.matmul %47, %48, %cst_31 {dimension_numbers = #tpu.dot_dimension_numbers<[1], [0], [0], [1], [0, 0, 1, 1], [], []>} : vector<256x128xbf16>, vector<128x128xbf16>, vector<256x128xf32> -> vector<256x128xf32>
    %c0_32 = arith.constant 0 : index
    %c0_33 = arith.constant 0 : index
    %50 = vector.load %arg9[%c0_32, %c0_33] : memref<128x128xbf16, #tpu.memory_space<vmem>>, vector<128x128xbf16>
    %cst_34 = arith.constant dense<0.000000e+00> : vector<256x128xf32>
    %51 = tpu.matmul %6, %50, %cst_34 {dimension_numbers = #tpu.dot_dimension_numbers<[1], [0], [0], [1], [0, 0, 1, 1], [], []>} : vector<256x128xbf16>, vector<128x128xbf16>, vector<256x128xf32> -> vector<256x128xf32>
    %52 = arith.addf %49, %51 : vector<256x128xf32>
    %53 = vector.broadcast %3 : vector<1x128xf32> to vector<256x128xf32>
    %54 = arith.addf %52, %53 : vector<256x128xf32>
    %cst_35 = arith.constant 0.000000e+00 : f32
    %55 = vector.broadcast %cst_35 : f32 to vector<256x128xf32>
    %56 = arith.maximumf %54, %55 : vector<256x128xf32>
    %57 = arith.truncf %56 : vector<256x128xf32> to vector<256x128xbf16>
    %c0_36 = arith.constant 0 : index
    %c0_37 = arith.constant 0 : index
    %c0_38 = arith.constant 0 : index
    %58 = vector.load %arg11[%c0_36, %c0_37, %c0_38] : memref<1x256x128xbf16, #tpu.memory_space<vmem>>, vector<1x256x128xbf16>
    %59 = vector.shape_cast %58 : vector<1x256x128xbf16> to vector<256x128xbf16>
    %60 = vector.shape_cast %57 : vector<256x128xbf16> to vector<1x256x128xbf16>
    tpu.vector_store %arg11[%c0_36, %c0_37, %c0_38], %60 {strides = array<i32>} : memref<1x256x128xbf16, #tpu.memory_space<vmem>>, vector<1x256x128xbf16>,
    return
  }
  func.func @transform_0(%arg0: i32, %arg1: i32) -> (i32, i32, i32) {
    %c0_i32 = arith.constant 0 : i32
    %c0_i32_0 = arith.constant 0 : i32
    return %arg0, %arg1, %c0_i32 : i32, i32, i32
  }
  func.func @transform_1(%arg0: i32, %arg1: i32) -> (i32, i32, i32) {
    %c0_i32 = arith.constant 0 : i32
    %c0_i32_0 = arith.constant 0 : i32
    %c0_i32_1 = arith.constant 0 : i32
    return %arg0, %c0_i32, %c0_i32_0 : i32, i32, i32
  }
  func.func @transform_2(%arg0: i32, %arg1: i32) -> (i32, i32, i32) {
    %c0_i32 = arith.constant 0 : i32
    %c0_i32_0 = arith.constant 0 : i32
    %c0_i32_1 = arith.constant 0 : i32
    return %arg0, %c0_i32, %c0_i32_0 : i32, i32, i32
  }
  func.func @transform_3(%arg0: i32, %arg1: i32) -> (i32, i32) {
    %c0_i32 = arith.constant 0 : i32
    %c0_i32_0 = arith.constant 0 : i32
    %c0_i32_1 = arith.constant 0 : i32
    return %c0_i32, %c0_i32_0 : i32, i32
  }
  func.func @transform_4(%arg0: i32, %arg1: i32) -> (i32, i32) {
    %c0_i32 = arith.constant 0 : i32
    %c0_i32_0 = arith.constant 0 : i32
    %c0_i32_1 = arith.constant 0 : i32
    return %c0_i32, %c0_i32_0 : i32, i32
  }
  func.func @transform_5(%arg0: i32, %arg1: i32) -> (i32, i32) {
    %c0_i32 = arith.constant 0 : i32
    %c0_i32_0 = arith.constant 0 : i32
    %c0_i32_1 = arith.constant 0 : i32
    return %c0_i32, %c0_i32_0 : i32, i32
  }
  func.func @transform_6(%arg0: i32, %arg1: i32) -> (i32, i32) {
    %c0_i32 = arith.constant 0 : i32
    %c0_i32_0 = arith.constant 0 : i32
    %c0_i32_1 = arith.constant 0 : i32
    return %c0_i32, %c0_i32_0 : i32, i32
  }
  func.func @transform_7(%arg0: i32, %arg1: i32) -> (i32, i32) {
    %c0_i32 = arith.constant 0 : i32
    %c0_i32_0 = arith.constant 0 : i32
    %c0_i32_1 = arith.constant 0 : i32
    return %c0_i32, %c0_i32_0 : i32, i32
  }
  func.func @transform_8(%arg0: i32, %arg1: i32) -> (i32, i32) {
    %c0_i32 = arith.constant 0 : i32
    %c0_i32_0 = arith.constant 0 : i32
    %c0_i32_1 = arith.constant 0 : i32
    return %c0_i32, %c0_i32_0 : i32, i32
  }
  func.func @transform_9(%arg0: i32, %arg1: i32) -> (i32, i32, i32) {
    %c0_i32 = arith.constant 0 : i32
    %c0_i32_0 = arith.constant 0 : i32
    return %arg0, %arg1, %c0_i32 : i32, i32, i32
  }
}

</mosaic_0001>

<bundles_post_ra>
// kernel: tpu_custom_call.1
= control target key start
LH: loop header
LB: loop body
LE: loop exit
PB: predicated region body
PF: predicated region fallthrough
CT: control target
= control target key end

     0   :  { %s5519_s0 = inlined_call_operand.hbm [shape: bf16[2,256,128], index: 0, kind: input, shape index: {}]   ;;  %s5520_s1 = inlined_call_operand.hbm [shape: bf16[2,128,128], index: 1, kind: input, shape index: {}]   ;;  %s5521_s2 = inlined_call_operand.hbm [shape: bf16[2,128,128], index: 2, kind: input, shape index: {}]   ;;  %s5522_s3 = inlined_call_operand.hbm [shape: bf16[128,128], index: 3, kind: input, shape index: {}]   ;;  %s5523_s4 = inlined_call_operand.hbm [shape: bf16[128,128], index: 4, kind: input, shape index: {}]   ;;  %s5524_s5 = inlined_call_operand.hbm [shape: bf16[128,128], index: 5, kind: input, shape index: {}]   ;;  %s5525_s6 = inlined_call_operand.hbm [shape: bf16[128,128], index: 6, kind: input, shape index: {}]   ;;  %s5526_s7 = inlined_call_operand.hbm [shape: bf16[128,128], index: 7, kind: input, shape index: {}]   ;;  %s5527_s8 = inlined_call_operand.vmem [shape: f32[1,640], index: 8, kind: input, shape index: {}]   ;;  %s5528_s9 = inlined_call_operand.hbm [shape: bf16[2,256,128], index: 9, kind: output, shape index: {}]  }
   0x1   :  { %5546 = sst [smem:[#allocation31_spill]] %s5520_s1 }
   0x2   :  { %5547 = sst [smem:[#allocation32_spill]] %s5522_s3 }
   0x3   :  { %5548 = sst [smem:[#allocation33_spill]] %s5524_s5 }
   0x4   :  { %5549 = sst [smem:[#allocation34_spill]] %s5527_s8 }
   0x5   :  { %5550 = sst [smem:[#allocation35_spill]] %s5528_s9 }
   0x6   :  { %14 = vsyncpa [#allocation3], 0 }
   0x7   :  { %16 = vsyncpa [#allocation3 + $0x1], 0 }
   0x8   :  { %17 = vsyncpa [#allocation6], 0 }
   0x9   :  { %19 = vsyncpa [#allocation6 + $0x1], 0 }
   0xa   :  { %20 = vsyncpa [#allocation9], 0 }
   0xb   :  { %21 = vsyncpa [#allocation12], 0 }
   0xc   :  { %22 = vsyncpa [#allocation15], 0 }
   0xd   :  { %23 = vsyncpa [#allocation4], 0 }
   0xe   :  { %25 = vsyncpa [#allocation4 + $0x1], 0  ;;  %s4653_s30 = smov 0   ;;  %s4655_s10 = smov 0  }
   0xf   :  { %s4657_s11 = smov 0   ;;  %s4659_s12 = smov 0  }
  0x10   :  { %s4661_s13 = smov 0   ;;  %s4663_s14 = smov 0  }
  0x11 LB: > { %5551 = sst [smem:[#allocation23_spill]] %s4568_s30  ;;  %s4684_s15 = sadd.s32 4294967295, %s4588_s14   ;;  %s4588_s14 = sphi %s4663_s14, %s31_s14   ;;  %s4584_s13 = sphi %s4661_s13, %s5596_s13   ;;  %s4580_s12 = sphi %s4659_s12, %s5595_s12   ;;  %s4576_s11 = sphi %s4657_s11, %s5591_s11   ;;  %s4572_s10 = sphi %s4655_s10, %s5594_s10   ;;  %s4568_s30 = sphi %s4653_s30, %s5593_s30  }
  0x12   : > { %5552 = sst [smem:[#allocation24_spill]] %s4576_s11  ;;  %p3144_p0 = scmp.ge.s32.totalorder %s4588_s14, 1 }
  0x13   : > { %5553 = sst [smem:[#allocation25_spill]] %s4580_s12  ;;  %p5541_p1 = scmp.eq.s32.totalorder %s4684_s15, 0 }
  0x14   : > { %5554 = sst [smem:[#allocation26_spill]] %s4588_s14  ;;  %p269_p2 = scmp.eq.s32.totalorder %s4684_s15, 1 }
  0x15   : > { %p282_p3 = scmp.lt.s32.totalorder %s4588_s14, 3  ;;  %s4590_s17 = smov [#allocation8]  }
  0x16   : > { %s294_s18 = sshll.u32 %s4590_s17, 4  ;;  %s4591_s20 = smov [#allocation11]   ;;  %s295_s18 = int_to_ptr.vmem [resolvable:$true] %s294_s18 }
  0x17   : > { %p4690_p4 = pnand %p3144_p0, %p282_p3  ;;  %s320_s21 = sshll.u32 %s4591_s20, 4  ;;  %s321_s21 = int_to_ptr.vmem [resolvable:$true] %s320_s21 }
  0x18   : > { %s4289_s23 = scalar_lea.vmem %s295_s18, 1024  ;;  %p4297_p12 = scmp.lt.s32.totalorder %s295_s18, %s295_s18 }
  0x19   : > { %s5555_s16 = scalar_select %p4690_p4, 1, 0 }
  0x1a   : > { %p3963_p5 = pneg %p4690_p4  ;;  %p4290_p9 = scmp.ne.s32.totalorder %s295_s18, %s4289_s23 }
  0x1b   : > { %p4298_p13 = scmp.lt.s32.totalorder %s4289_s23, %s4289_s23 }
  0x1c   : > { %p4699_p7 = pnand %p3963_p5, %p5541_p1 }
  0x1d   : > { %p4299_p0 = por %p4298_p13, %p4297_p12 }
  0x1e   : > { %p4705_p8 = pneg %p4699_p7 }
  0x20   : > { %p4292_p10 = pnand %p4290_p9, %p4705_p8 }
  0x22   : > { %p4293_p11 = pneg %p4292_p10 }
  0x24   : > { %p4300_p3 = pnand %p4299_p0, %p4293_p11 }
  0x26   : > { %4303 = shalt.err (!%p4300_p3)
}
  0x27   : > { %s5530_s24 = smov 64   ;;  %s5532_s25 = smov 4  }
  0x28   : > { %s5558_s3 = sld [smem:[#allocation32_spill]]  ;;  %s4315_s28 = scalar_lea.vmem %s321_s21, 1024 }
  0x29   : > { %p4316_p5 = scmp.ne.s32.totalorder %s321_s21, %s4315_s28  ;;  %p4323_p12 = scmp.lt.s32.totalorder %s321_s21, %s321_s21 }
  0x2a   : > { %p4324_p11 = scmp.lt.s32.totalorder %s4315_s28, %s4315_s28 }
  0x2b   : > { %p4318_p9 = pnand %p4316_p5, %p4705_p8 }
  0x2c   : > { %p4325_p13 = por %p4324_p11, %p4323_p12 }
  0x2d   : > { %p4319_p10 = pneg %p4318_p9 }
  0x2e   : > { %3966 = dma.hbm_to_vmem [thread:$0]  (!%p4699_p7), %s5558_s3, 1024, %s295_s18, [#allocation9], %s5530_s24, %s5530_s24, %s5532_s25  }
  0x2f   : > { %p4326_p0 = pnand %p4325_p13, %p4319_p10 }
  0x31   : > { %4329 = shalt.err (!%p4326_p0)
}
  0x32   : > { %s5559_s5 = sld [smem:[#allocation33_spill]]  ;;  %s3143_s18 = sadd.s32 4294967294, %s4588_s14  }
  0x33   : > { %s43_s20 = sadd.s32 1, %s4584_s13  ;;  %s52_s23 = sadd.s32 1, %s4576_s11 }
  0x34   : > { %p45_p3 = scmp.ge.s32.totalorder %s43_s20, 2  ;;  %p59_p5 = scmp.ne.s32.totalorder %s4576_s11, %s4572_s10 }
  0x35   : > { %p60_p9 = scmp.eq.s32.totalorder %s4588_s14, 0  ;;  %p65_p10 = scmp.ne.s32.totalorder %s4572_s10, %s4568_s30 }
  0x36   : > { %s5598_s20 = smov (%p45_p3, %s43_s20), 0  ;;  %p4749_p13 = por %p269_p2, %p59_p5 }
  0x37   : > { %5560 = sst [smem:[#allocation27_spill]] %s5598_s20  ;;  %p61_p12 = por %p60_p9, %p59_p5 }
  0x38   : > { %3972 = dma.hbm_to_vmem [thread:$0]  (!%p4699_p7), %s5559_s5, 1024, %s321_s21, [#allocation12], %s5530_s24, %s5530_s24, %s5532_s25  }
  0x39   : > { %p4741_p11 = por %p5541_p1, %p65_p10  ;;  %s47_s21 = ssub.s32 %s4584_s13, %s5598_s20 }
  0x3a   : > { %s5562_s27 = scalar_select %p4749_p13, 1, 0 }
  0x3b   : > { %p50_p0 = scmp.eq.s32.totalorder %s47_s21, 0  ;;  %p275_p6 = scmp.eq.s32.totalorder %s3143_s18, 1 }
  0x3c   : > { %5563 = sst [smem:[#allocation28_spill]] %s5562_s27  ;;  %p3998_p4 = scmp.lt.s32.totalorder %s4588_s14, 2 }
  0x3d   : > { %s4755_s28 = sand.u32 1, %s4576_s11   ;;  %p4760_p3 = por %p275_p6, %p65_p10 }
  0x3e   : > { %s4758_s29 = scalar_select %p50_p0, %s4576_s11, %s52_s23  }
  0x3f   : > { %s5565_s17 = scalar_select %p4760_p3, 1, 0 }
  0x40   : > { %5564 = sst [smem:[#allocation29_spill]] %s4758_s29  ;;  %p4764_p9 = pnand %p3998_p4, %p61_p12 }
  0x41   : > { %5566 = sst [smem:[#allocation30_spill]] %s5565_s17  ;;  %s386_s25 = sand.u32 1, %s4588_s14  }
  0x42   : > { %s3154_s3 = sshll.u32 %s4755_s28, 6  ;;  %s3285_s21 = sshll.u32 %s4584_s13, 10 }
  0x43   : > { %s5568_s1 = sld [smem:[#allocation31_spill]]  ;;  %s390_s30 = scalar_lea.vmem [#allocation5], %s3154_s3 }
  0x44   : > { %s397_s23 = sshll.u32 %s390_s30, 4  ;;  %s4774_s29 = scalar_lea.sflag [#allocation6], %s386_s25  ;;  %s398_s23 = int_to_ptr.vmem [resolvable:$true] %s397_s23 }
  0x45   : > { %p5545_p2 = pneg %p4764_p9  ;;  %s4343_s11 = scalar_lea.vmem %s398_s23, 1024 }
  0x46   : > { %p4344_p4 = scmp.ne.s32.totalorder %s398_s23, %s4343_s11  ;;  %s4594_s14 = smov [#allocation5]  }
  0x47   : > { %s4348_s17 = sshll.u32 %s4594_s14, 4  ;;  %s4349_s17 = int_to_ptr.vmem [resolvable:$false] %s4348_s17 }
  0x48   : > { %p4346_p6 = pnand %p4344_p4, %p5545_p2  ;;  %s4350_s9 = scalar_lea.vmem %s4349_s17, 2048 }
  0x49   : > { %s396_s20 = scalar_lea.hbm %s5568_s1, %s3285_s21  ;;  %p4351_p10 = scmp.lt.s32.totalorder %s398_s23, %s4349_s17 }
  0x4a   : > { %p4347_p5 = pneg %p4346_p6  ;;  %p4352_p12 = scmp.lt.s32.totalorder %s4350_s9, %s4343_s11 }
  0x4c   : > { %p4353_p0 = por %p4352_p12, %p4351_p10 }
  0x4e   : > { %p4354_p1 = pnand %p4353_p0, %p4347_p5 }
  0x50   : > { %4357 = shalt.err (!%p4354_p1)
}
  0x51   : > { %s5569_s5 = smov 4   ;;  %s5570_s30 = smov 64  }
  0x52   : > { %3985 = dma.hbm_to_vmem [thread:$0]  (!%p4764_p9), %s396_s20, 1024, %s398_s23, %s4774_s29, %s5570_s30, %s5570_s30, %s5569_s5  }
  0x53   : > { %s4790_s1 = scalar_lea.hbm %s5521_s2, %s3285_s21  ;;  %s411_s14 = scalar_lea.vmem [#allocation7], %s3154_s3 }
  0x54   : > { %s418_s27 = sshll.u32 %s411_s14, 4  ;;  %s4595_s9 = smov [#allocation10]   ;;  %s4792_s27 = int_to_ptr.vmem [resolvable:$true] %s418_s27 }
  0x55   : > { %s307_s11 = sshll.u32 %s4595_s9, 4  ;;  %s4596_s17 = smov [#allocation13]   ;;  %s308_s11 = int_to_ptr.vmem [resolvable:$true] %s307_s11 }
  0x56   : > { %s333_s12 = sshll.u32 %s4596_s17, 4  ;;  %s4369_s8 = scalar_lea.vmem %s308_s11, 1024  ;;  %s334_s12 = int_to_ptr.vmem [resolvable:$true] %s333_s12 }
  0x57   : > { %p4370_p1 = scmp.ne.s32.totalorder %s308_s11, %s4369_s8  ;;  %p4377_p5 = scmp.lt.s32.totalorder %s308_s11, %s308_s11 }
  0x58   : > { %p4378_p10 = scmp.lt.s32.totalorder %s4369_s8, %s4369_s8 }
  0x59   : > { %p4372_p4 = pnand %p4370_p1, %p4705_p8 }
  0x5a   : > { %p4379_p12 = por %p4378_p10, %p4377_p5 }
  0x5b   : > { %p4373_p6 = pneg %p4372_p4 }
  0x5d   : > { %p4380_p0 = pnand %p4379_p12, %p4373_p6 }
  0x5f   : > { %4383 = shalt.err (!%p4380_p0)
}
  0x60   : > { %3969 = dma.hbm_to_vmem [thread:$0]  (!%p4699_p7), %s5523_s4, 1024, %s308_s11, [#allocation9], %s5570_s30, %s5570_s30, %s5569_s5  }
  0x61   : > { %s4395_s21 = scalar_lea.vmem %s334_s12, 1024  ;;  %p4403_p3 = scmp.lt.s32.totalorder %s334_s12, %s334_s12 }
  0x62   : > { %p4396_p2 = scmp.ne.s32.totalorder %s334_s12, %s4395_s21  ;;  %p4404_p5 = scmp.lt.s32.totalorder %s4395_s21, %s4395_s21 }
  0x64   : > { %p4398_p1 = pnand %p4396_p2, %p4705_p8  ;;  %p4405_p6 = por %p4404_p5, %p4403_p3 }
  0x66   : > { %p4399_p4 = pneg %p4398_p1 }
  0x68   : > { %p4406_p10 = pnand %p4405_p6, %p4399_p4 }
  0x6a   : > { %4409 = shalt.err (!%p4406_p10)
}
  0x6b   : > { %3975 = dma.hbm_to_vmem [thread:$0]  (!%p4699_p7), %s5525_s6, 1024, %s334_s12, [#allocation12], %s5570_s30, %s5570_s30, %s5569_s5  }
  0x6c   : > { %s4597_s25 = smov [#allocation14]   ;;  %s3151_s14 = sshll.u32 %s4755_s28, 7 }
  0x6d   : > { %s346_s18 = sshll.u32 %s4597_s25, 4  ;;  %s347_s18 = int_to_ptr.vmem [resolvable:$true] %s346_s18 }
  0x6e   : > { %s4421_s9 = scalar_lea.vmem %s347_s18, 1024  ;;  %p4429_p0 = scmp.lt.s32.totalorder %s347_s18, %s347_s18 }
  0x6f   : > { %p4422_p2 = scmp.ne.s32.totalorder %s347_s18, %s4421_s9  ;;  %p4430_p1 = scmp.lt.s32.totalorder %s4421_s9, %s4421_s9 }
  0x71   : > { %p4424_p3 = pnand %p4422_p2, %p4705_p8  ;;  %p4431_p4 = por %p4430_p1, %p4429_p0 }
  0x73   : > { %p4425_p12 = pneg %p4424_p3 }
  0x75   : > { %p4432_p5 = pnand %p4431_p4, %p4425_p12 }
  0x77   : > { %4435 = shalt.err (!%p4432_p5)
}
  0x78   : > { %3978 = dma.hbm_to_vmem [thread:$0]  (!%p4699_p7), %s5526_s7, 1024, %s347_s18, [#allocation15], %s5570_s30, %s5570_s30, %s5569_s5  }
  0x79   : > { %s3284_s22 = sshll.u32 %s4584_s13, 11  ;;  %s367_s21 = scalar_lea.vmem [#allocation2], %s3151_s14 }
  0x7a   : > { %s375_s20 = scalar_lea.hbm %s5519_s0, %s3284_s22  ;;  %s376_s8 = sshll.u32 %s367_s21, 4  ;;  %s377_s8 = int_to_ptr.vmem [resolvable:$true] %s376_s8 }
  0x7b   : > { %s364_s23 = scalar_lea.sflag [#allocation3], %s4755_s28  ;;  %s4449_s19 = scalar_lea.vmem %s377_s8, 2048 }
  0x7c   : > { %p4450_p8 = scmp.ne.s32.totalorder %s377_s8, %s4449_s19  ;;  %p5571_p6 = pneg %p4764_p9 }
  0x7d   : > { %s4598_s25 = smov [#allocation2]  }
  0x7e   : > { %p4452_p10 = pnand %p4450_p8, %p5571_p6  ;;  %s4454_s9 = sshll.u32 %s4598_s25, 4  ;;  %s4455_s9 = int_to_ptr.vmem [resolvable:$false] %s4454_s9 }
  0x7f   : > { %s4456_s12 = scalar_lea.vmem %s4455_s9, 4096  ;;  %p4457_p7 = scmp.lt.s32.totalorder %s377_s8, %s4455_s9 }
  0x80   : > { %p4453_p2 = pneg %p4452_p10  ;;  %p4458_p3 = scmp.lt.s32.totalorder %s4456_s12, %s4449_s19 }
  0x82   : > { %p4459_p12 = por %p4458_p3, %p4457_p7 }
  0x84   : > { %p4460_p0 = pnand %p4459_p12, %p4453_p2 }
  0x86   : > { %4463 = shalt.err (!%p4460_p0)
}
  0x87   : > { %3982 = dma.hbm_to_vmem [thread:$0]  (!%p4764_p9), %s375_s20, 2048, %s377_s8, %s364_s23, %s5570_s30, %s5570_s30, %s5569_s5  }
  0x88   : > { %s4477_s28 = scalar_lea.vmem %s4792_s27, 1024  ;;  %p5572_p4 = pmov %p5571_p6 }
  0x89   : > { %p4478_p1 = scmp.ne.s32.totalorder %s4792_s27, %s4477_s28  ;;  %s4599_s18 = smov [#allocation7]  }
  0x8a   : > { %s4482_s14 = sshll.u32 %s4599_s18, 4  ;;  %s4483_s14 = int_to_ptr.vmem [resolvable:$false] %s4482_s14 }
  0x8b   : > { %p4480_p5 = pnand %p4478_p1, %p5572_p4  ;;  %s4484_s11 = scalar_lea.vmem %s4483_s14, 2048 }
  0x8c   : > { %p4485_p6 = scmp.lt.s32.totalorder %s4792_s27, %s4483_s14  ;;  %p4486_p10 = scmp.lt.s32.totalorder %s4484_s11, %s4477_s28 }
  0x8d   : > { %p4481_p8 = pneg %p4480_p5 }
  0x8e   : > { %p4487_p2 = por %p4486_p10, %p4485_p6 }
  0x90   : > { %p4488_p7 = pnand %p4487_p2, %p4481_p8 }
  0x92   : > { %4491 = shalt.err (!%p4488_p7)
}
  0x93   : > { %3988 = dma.hbm_to_vmem [thread:$0]  (!%p4764_p9), %s4790_s1, 1024, %s4792_s27, %s4774_s29, %s5570_s30, %s5570_s30, %s5569_s5  }
  0x94   : > { %p5573_p3 = scmp.ne.s32.totalorder %s5555_s16, 0 }
  0x95   : > { %s4855_s22 = sand.u32 (!%p5573_p3), 1, %s4572_s10  }
  0x96   : > { %430 = sbr.rel (%p5573_p3) target bundleno = 1815 (0x717), region = 56  ;;  %s3161_s17 = sshll.u32 (!%p5573_p3), %s4855_s22, 7 }
  0x97   : > { %s433_s3 = scalar_lea.sflag (!%p5573_p3), [#allocation3], %s4855_s22  ;;  %s4861_s24 = scalar_lea.vmem (!%p5573_p3), [#allocation2], %s3161_s17 }
  0x9b   : > { %4543 = dma.done.wait (%p4741_p11), %s433_s3, 2048  }
  0x9c   : > { %4545 = vsyncadd (%p4741_p11), %s433_s3, 4294965248  ;;  %s441_s1 = sand.u32 1, %s4684_s15   ;;  %s3162_s16 = sshll.u32 %s4855_s22, 6 }
  0x9d   : > { %s442_s27 = scalar_lea.sflag [#allocation6], %s441_s1  ;;  %s4869_s29 = scalar_lea.vmem [#allocation5], %s3162_s16 }
  0x9e   : > { %4547 = dma.done.wait (%p4741_p11), %s442_s27, 2048  }
  0x9f   : > { %4549 = vsyncadd (%p4741_p11), %s442_s27, 4294965248  ;;  %s4875_s5 = scalar_lea.vmem [#allocation7], %s3162_s16  ;;  %p5574_p9 = scmp.eq.s32.totalorder %s4684_s15, 0 }
  0xa1   : > { %4551 = dma.done.wait (%p5574_p9), [#allocation9], 2048   ;;  %p5575_p12 = pmov %p5574_p9 }
  0xa2   : > { %p5576_p0 = pmov %p5574_p9 }
  0xa3   : > { %4553 = vsyncadd (%p5575_p12), [#allocation9], 4294965248 }
  0xa4   : > { %4555 = dma.done.wait (%p5576_p0), [#allocation12], 2048   ;;  %p5577_p1 = pmov %p5576_p0 }
  0xa5   : > { %p5578_p4 = pmov %p5576_p0 }
  0xa6   : > { %4557 = vsyncadd (%p5577_p1), [#allocation12], 4294965248 }
  0xa7   : > { %4559 = dma.done.wait (%p5578_p4), [#allocation15], 1024   ;;  %p5579_p5 = pmov %p5576_p0 }
  0xa8   : > { %v4062_v0 = vld [vmem:[#allocation8 + $0x38] sm:$0xff]   ;;  %v4063_v1 = vld [vmem:[#allocation8 + $0x30] sm:$0xff]   ;;  %v4064_v2 = vld [vmem:[#allocation8 + $0x28] sm:$0xff]   ;;  %s5580_s30 = sld [smem:[#allocation34_spill]]  ;;  %s5404_s18 = scalar_lea.vmem [#allocation16], %s3161_s17 }
  0xa9   : > { %4561 = vsyncadd (%p5579_p5), [#allocation15], 4294966272  ;;  %3583 = vmatprep.subr.bf16.mxu0 %v4062_v0  ;;  %v4065_v3 = vld [vmem:[#allocation8 + $0x20] sm:$0xff]   ;;  %v4066_v5 = vld [vmem:[#allocation8 + $0x18] sm:$0xff]   ;;  %s5582_s14 = sld [smem:[#allocation25_spill]]  ;;  %s2964_s3 = sshll.u32 %s5404_s18, 4  ;;  %s5469_s3 = int_to_ptr.vmem [resolvable:$true] %s2964_s3 }
  0xaa   : > { %3584 = vmatpush3.bf16.msra.mxu0 %v4062_v0  ;;  %v4070_v4 = vld [vmem:[%s4861_s24] sm:$0xff]   ;;  %v4067_v6 = vld [vmem:[#allocation8 + $0x10] sm:$0xff]   ;;  %v4068_v7 = vld [vmem:[#allocation8 + $0x8] sm:$0xff]   ;;  %s5584_s16 = sld [smem:[#allocation35_spill]]  ;;  %s4600_s15 = smov [#allocation16]  }
  0xab   : > { %3585 = vmatprep.subr.bf16.mxu0 %v4063_v1  ;;  %3599 = vmatprep.mubr.bf16.mxu0 %v4070_v4  ;;  %v4069_v8 = vld [vmem:[#allocation8] sm:$0xff]   ;;  %v4086_v9 = vld [vmem:[#allocation10 + $0x38] sm:$0xff]   ;;  %v4087_v10 = vld [vmem:[#allocation10 + $0x30] sm:$0xff]   ;;  %s4496_s26 = sshll.u32 %s4600_s15, 4  ;;  %s4497_s26 = int_to_ptr.vmem [resolvable:$false] %s4496_s26 }
  0xac   : > { %3631 = vmatprep.subr.bf16.mxu1 %v4086_v9  ;;  %v4071_v11 = vld [vmem:[%s4861_s24 + $0x8] sm:$0xff]   ;;  %v4072_v13 = vld [vmem:[%s4861_s24 + $0x10] sm:$0xff]   ;;  %v4089_v14 = vld [vmem:[#allocation10 + $0x20] sm:$0xff]   ;;  %p4499_p10 = scmp.lt.s32.totalorder %s5469_s3, %s4497_s26 }
  0xad   : > { %3632 = vmatpush3.bf16.msra.mxu1 %v4086_v9  ;;  %v4088_v12 = vld [vmem:[#allocation10 + $0x28] sm:$0xff]   ;;  %v4090_v15 = vld [vmem:[#allocation10 + $0x18] sm:$0xff]   ;;  %v4074_v17 = vld [vmem:[%s4861_s24 + $0x20] sm:$0xff]  }
  0xae   : > { %3586 = vmatpush3.bf16.msra.mxu0 %v4063_v1  ;;  %3633 = vmatprep.subr.bf16.mxu1 %v4087_v10  ;;  %v4073_v16 = vld [vmem:[%s4861_s24 + $0x18] sm:$0xff]   ;;  %v4075_v18 = vld [vmem:[%s4861_s24 + $0x28] sm:$0xff]   ;;  %v4076_v19 = vld [vmem:[%s4861_s24 + $0x30] sm:$0xff]   ;;  %s5581_s20 = smov %s5580_s30 }
  0xaf   : > { %3587 = vmatprep.subr.bf16.mxu0 %v4064_v2  ;;  %v4077_v20 = vld [vmem:[%s4861_s24 + $0x38] sm:$0xff]   ;;  %v4078_v21 = vld [vmem:[%s4861_s24 + $0x40] sm:$0xff]   ;;  %v4079_v22 = vld [vmem:[%s4861_s24 + $0x48] sm:$0xff]   ;;  %s3319_s17 = sshll.u32 %s5582_s14, 11 }
  0xb0   : > { %v4080_v23 = vld [vmem:[%s4861_s24 + $0x50] sm:$0xff]   ;;  %v4081_v24 = vld [vmem:[%s4861_s24 + $0x58] sm:$0xff]   ;;  %v4082_v25 = vld [vmem:[%s4861_s24 + $0x60] sm:$0xff]   ;;  %s5467_s27 = scalar_lea.hbm %s5584_s16, %s3319_s17 }
  0xb1   : > { %3634 = vmatpush3.bf16.msra.mxu1 %v4087_v10  ;;  %v4083_v26 = vld [vmem:[%s4861_s24 + $0x68] sm:$0xff]   ;;  %v4084_v27 = vld [vmem:[%s4861_s24 + $0x70] sm:$0xff]   ;;  %v4085_v28 = vld [vmem:[%s4861_s24 + $0x78] sm:$0xff]  }
  0xb2   : > { %3588 = vmatpush3.bf16.msra.mxu0 %v4064_v2  ;;  %3635 = vmatprep.subr.bf16.mxu1 %v4088_v12  ;;  %v4091_v29 = vld [vmem:[#allocation10 + $0x10] sm:$0xff]   ;;  %v4092_v30 = vld [vmem:[#allocation10 + $0x8] sm:$0xff]   ;;  %v4093_v31 = vld [vmem:[#allocation10] sm:$0xff]  }
  0xb3   : > { %3589 = vmatprep.subr.bf16.mxu0 %v4065_v3  ;;  %v4094_v32 = vld [vmem:[%s4869_s29 + $0x38] sm:$0xff]   ;;  %v4907_v33 = vld [vmem:[%s4869_s29 + $0x30] sm:$0xff]   ;;  %v4911_v34 = vld [vmem:[%s4869_s29 + $0x28] sm:$0xff]  }
  0xb4   : > { %v4916_v35 = vld [vmem:[%s4869_s29 + $0x20] sm:$0xff]   ;;  %v4921_v36 = vld [vmem:[%s4869_s29 + $0x18] sm:$0xff]   ;;  %v4926_v37 = vld [vmem:[%s4869_s29 + $0x10] sm:$0xff]  }
  0xb5   : > { %3636 = vmatpush3.bf16.msra.mxu1 %v4088_v12  ;;  %v4931_v38 = vld [vmem:[%s4869_s29 + $0x8] sm:$0xff]   ;;  %v4939_v41 = vld [vmem:[%s5580_s30] ss:$0 sm:$0xff]  ;;  %s4498_s30 = scalar_lea.vmem %s4497_s26, 4096 }
  0xb6   : > { %3590 = vmatpush3.bf16.msra.mxu0 %v4065_v3  ;;  %3637 = vmatprep.subr.bf16.mxu1 %v4089_v14 }
  0xb7   : > { %3591 = vmatprep.subr.bf16.mxu0 %v4066_v5 }
  0xb9   : > { %3638 = vmatpush3.bf16.msra.mxu1 %v4089_v14 }
  0xba   : > { %3592 = vmatpush3.bf16.msra.mxu0 %v4066_v5  ;;  %3639 = vmatprep.subr.bf16.mxu1 %v4090_v15 }
  0xbb   : > { %3593 = vmatprep.subr.bf16.mxu0 %v4067_v6 }
  0xbd   : > { %3640 = vmatpush3.bf16.msra.mxu1 %v4090_v15 }
  0xbe   : > { %3594 = vmatpush3.bf16.msra.mxu0 %v4067_v6  ;;  %3641 = vmatprep.subr.bf16.mxu1 %v4091_v29 }
  0xbf   : > { %3595 = vmatprep.subr.bf16.mxu0 %v4068_v7 }
  0xc1   : > { %3642 = vmatpush3.bf16.msra.mxu1 %v4091_v29 }
  0xc2   : > { %3596 = vmatpush3.bf16.msra.mxu0 %v4068_v7  ;;  %3643 = vmatprep.subr.bf16.mxu1 %v4092_v30 }
  0xc3   : > { %3597 = vmatprep.subr.bf16.mxu0 %v4069_v8 }
  0xc5   : > { %3644 = vmatpush3.bf16.msra.mxu1 %v4092_v30 }
  0xc6   : > { %3598 = vmatpush3.bf16.msra.mxu0 %v4069_v8  ;;  %3645 = vmatprep.subr.bf16.mxu1 %v4093_v31 }
  0xc7   : > { %3679 = vmatprep.subr.bf16.mxu0 %v4094_v32 }
  0xc9   : > { %3600 = vmatmul.mubr.bf16.vlgmr.msra.gmra.mxu0 %v4071_v11  ;;  %3646 = vmatpush3.bf16.msra.mxu1 %v4093_v31 }
  0xca   : > { %3603 = vmatprep.mubr.bf16.mxu0 %v4072_v13  ;;  %3919 = vmatprep.subr.bf16.mxu1 %v4094_v32 }
  0xcb   : > { %3680 = vmatpush3.bf16.xpose.msra.mxu0 %v4094_v32 }
  0xcc   : > { %3681 = vmatprep.subr.bf16.mxu0 %v4907_v33 }
  0xd1   : > { %3604 = vmatmul.mubr.bf16.gmra.mxu0 %v4073_v16 }
  0xd2   : > { %3607 = vmatprep.mubr.bf16.mxu0 %v4074_v17 }
  0xd3   : > { %3682 = vmatpush3.bf16.xpose.msra.mxu0 %v4907_v33 }
  0xd4   : > { %3683 = vmatprep.subr.bf16.mxu0 %v4911_v34 }
  0xd9   : > { %3608 = vmatmul.mubr.bf16.gmra.mxu0 %v4075_v18 }
  0xda   : > { %3611 = vmatprep.mubr.bf16.mxu0 %v4076_v19 }
  0xdb   : > { %3684 = vmatpush3.bf16.xpose.msra.mxu0 %v4911_v34 }
  0xdc   : > { %3685 = vmatprep.subr.bf16.mxu0 %v4916_v35 }
  0xe1   : > { %3612 = vmatmul.mubr.bf16.gmra.mxu0 %v4077_v20 }
  0xe2   : > { %3615 = vmatprep.mubr.bf16.mxu0 %v4078_v21 }
  0xe3   : > { %3686 = vmatpush3.bf16.xpose.msra.mxu0 %v4916_v35 }
  0xe4   : > { %3687 = vmatprep.subr.bf16.mxu0 %v4921_v36 }
  0xe9   : > { %3616 = vmatmul.mubr.bf16.gmra.mxu0 %v4079_v22 }
  0xea   : > { %3619 = vmatprep.mubr.bf16.mxu0 %v4080_v23 }
  0xeb   : > { %3688 = vmatpush3.bf16.xpose.msra.mxu0 %v4921_v36 }
  0xec   : > { %3689 = vmatprep.subr.bf16.mxu0 %v4926_v37 }
  0xf1   : > { %3620 = vmatmul.mubr.bf16.gmra.mxu0 %v4081_v24 }
  0xf2   : > { %3623 = vmatprep.mubr.bf16.mxu0 %v4082_v25 }
  0xf3   : > { %3690 = vmatpush3.bf16.xpose.msra.mxu0 %v4926_v37 }
  0xf4   : > { %3691 = vmatprep.subr.bf16.mxu0 %v4931_v38 }
  0xf9   : > { %3624 = vmatmul.mubr.bf16.gmra.mxu0 %v4083_v26 }
  0xfa   : > { %3627 = vmatprep.mubr.bf16.mxu0 %v4084_v27 }
  0xfb   : > { %3692 = vmatpush3.bf16.xpose.msra.mxu0 %v4931_v38 }
 0x101   : > { %3628 = vmatmul.mubr.bf16.gmra.mxu0 %v4085_v28 }
 0x189   : > { %v3601_v39 = vpop.f32.mrf.mxu0 }
 0x18a   : > { %v768_v45 = vadd.f32 %v3601_v39, %v4939_v41 }
 0x18b   : > { %v759_v40 = vpop.f32.mrf.mxu0 }
 0x18c   : > { %v760_v43 = vadd.f32 %v4939_v41, %v759_v40  ;;  %v888_v52 = vmax.f32 %v768_v45, 0.0 }
 0x18d   : > { %v3602_v42 = vpop.f32.mrf.mxu0 }
 0x18e   : > { %v771_v44 = vadd.f32 %v3602_v42, %v4939_v41  ;;  %v886_v50 = vmax.f32 %v760_v43, 0.0 }
 0x18f   : > { %v762_v46 = vpop.f32.mrf.mxu0 }
 0x190   : > { %v763_v47 = vadd.f32 %v4939_v41, %v762_v46  ;;  %v889_v48 = vmax.f32 %v771_v44, 0.0 }
 0x191   : > { %v3605_v49 = vpop.f32.mrf.mxu0 }
 0x192   : > { %v887_v51 = vmax.f32 %v763_v47, 0.0  ;;  %v919_v55 = vpack.c.bf16 %v889_v48, %v888_v52  ;;  %v784_v59 = vadd.f32 %v3605_v49, %v4939_v41 }
 0x193   : > { %v775_v53 = vpop.f32.mrf.mxu0 }
 0x194   : > { %v918_v54 = vpack.c.bf16 %v887_v51, %v886_v50  ;;  %v776_v57 = vadd.f32 %v4939_v41, %v775_v53  ;;  %v892_v2 = vmax.f32 %v784_v59, 0.0 }
 0x195   : > { %v3606_v56 = vpop.f32.mrf.mxu0 }
 0x196   : > { %v787_v58 = vadd.f32 %v3606_v56, %v4939_v41  ;;  %3647 = vmatprep.mubr.bf16.mxu1 %v918_v54  ;;  %v890_v0 = vmax.f32 %v776_v57, 0.0 }
 0x197   : > { %v778_v60 = vpop.f32.mrf.mxu0  ;;  %3648 = vmatmul.mubr.bf16.vlgmr.msra.gmra.mxu1 %v919_v55 }
 0x198   : > { %v779_v61 = vadd.f32 %v4939_v41, %v778_v60  ;;  %3927 = vmatpush3.bf16.xpose.msra.mxu1 %v4094_v32  ;;  %v893_v62 = vmax.f32 %v787_v58, 0.0 }
 0x199   : > { %v3609_v63 = vpop.f32.mrf.mxu0  ;;  %3920 = vmatprep.subr.bf16.mxu1 %v4907_v33 }
 0x19a   : > { %v891_v1 = vmax.f32 %v779_v61, 0.0  ;;  %v921_v5 = vpack.c.bf16 %v893_v62, %v892_v2  ;;  %v800_v9 = vadd.f32 %v3609_v63, %v4939_v41 }
 0x19b   : > { %v791_v3 = vpop.f32.mrf.mxu0 }
 0x19c   : > { %v920_v4 = vpack.c.bf16 %v891_v1, %v890_v0  ;;  %v792_v7 = vadd.f32 %v4939_v41, %v791_v3  ;;  %v896_v16 = vmax.f32 %v800_v9, 0.0 }
 0x19d   : > { %v3610_v6 = vpop.f32.mrf.mxu0 }
 0x19e   : > { %v803_v8 = vadd.f32 %v3610_v6, %v4939_v41  ;;  %3651 = vmatprep.mubr.bf16.mxu1 %v920_v4  ;;  %v894_v14 = vmax.f32 %v792_v7, 0.0 }
 0x19f   : > { %v794_v10 = vpop.f32.mrf.mxu0  ;;  %3652 = vmatmul.mubr.bf16.gmra.mxu1 %v921_v5 }
 0x1a0   : > { %v795_v11 = vadd.f32 %v4939_v41, %v794_v10  ;;  %3928 = vmatpush3.bf16.xpose.msra.mxu1 %v4907_v33  ;;  %v897_v12 = vmax.f32 %v803_v8, 0.0 }
 0x1a1   : > { %v3613_v13 = vpop.f32.mrf.mxu0  ;;  %3921 = vmatprep.subr.bf16.mxu1 %v4911_v34 }
 0x1a2   : > { %v895_v15 = vmax.f32 %v795_v11, 0.0  ;;  %v923_v19 = vpack.c.bf16 %v897_v12, %v896_v16  ;;  %v816_v23 = vadd.f32 %v3613_v13, %v4939_v41 }
 0x1a3   : > { %v807_v17 = vpop.f32.mrf.mxu0 }
 0x1a4   : > { %v922_v18 = vpack.c.bf16 %v895_v15, %v894_v14  ;;  %v808_v21 = vadd.f32 %v4939_v41, %v807_v17  ;;  %v900_v30 = vmax.f32 %v816_v23, 0.0 }
 0x1a5   : > { %v3614_v20 = vpop.f32.mrf.mxu0 }
 0x1a6   : > { %v819_v22 = vadd.f32 %v3614_v20, %v4939_v41  ;;  %3655 = vmatprep.mubr.bf16.mxu1 %v922_v18  ;;  %v898_v28 = vmax.f32 %v808_v21, 0.0 }
 0x1a7   : > { %v810_v24 = vpop.f32.mrf.mxu0  ;;  %3656 = vmatmul.mubr.bf16.gmra.mxu1 %v923_v19 }
 0x1a8   : > { %v811_v25 = vadd.f32 %v4939_v41, %v810_v24  ;;  %3929 = vmatpush3.bf16.xpose.msra.mxu1 %v4911_v34  ;;  %v901_v26 = vmax.f32 %v819_v22, 0.0 }
 0x1a9   : > { %v3617_v27 = vpop.f32.mrf.mxu0  ;;  %3922 = vmatprep.subr.bf16.mxu1 %v4916_v35 }
 0x1aa   : > { %v899_v29 = vmax.f32 %v811_v25, 0.0  ;;  %v925_v33 = vpack.c.bf16 %v901_v26, %v900_v30  ;;  %v832_v43 = vadd.f32 %v3617_v27, %v4939_v41  ;;  %v4101_v26 = vld [vmem:[%s4869_s29] sm:$0xff]   ;;  %s2949_s29 = scalar_lea.sflag [#allocation4], %s4855_s22 }
 0x1ab   : > { %v823_v31 = vpop.f32.mrf.mxu0  ;;  %3693 = vmatprep.subr.bf16.mxu0 %v4101_v26 }
 0x1ac   : > { %v924_v32 = vpack.c.bf16 %v899_v29, %v898_v28  ;;  %v824_v40 = vadd.f32 %v4939_v41, %v823_v31  ;;  %v904_v49 = vmax.f32 %v832_v43, 0.0  ;;  %3694 = vmatpush3.bf16.xpose.msra.mxu0 %v4101_v26 }
 0x1ad   : > { %v3618_v39 = vpop.f32.mrf.mxu0 }
 0x1ae   : > { %v835_v42 = vadd.f32 %v3618_v39, %v4939_v41  ;;  %3659 = vmatprep.mubr.bf16.mxu1 %v924_v32  ;;  %v902_v47 = vmax.f32 %v824_v40, 0.0 }
 0x1af   : > { %v826_v44 = vpop.f32.mrf.mxu0  ;;  %3660 = vmatmul.mubr.bf16.gmra.mxu1 %v925_v33 }
 0x1b0   : > { %v827_v34 = vadd.f32 %v4939_v41, %v826_v44  ;;  %3930 = vmatpush3.bf16.xpose.msra.mxu1 %v4916_v35  ;;  %v905_v45 = vmax.f32 %v835_v42, 0.0 }
 0x1b1   : > { %v3621_v46 = vpop.f32.mrf.mxu0  ;;  %3923 = vmatprep.subr.bf16.mxu1 %v4921_v36 }
 0x1b2   : > { %v903_v48 = vmax.f32 %v827_v34, 0.0  ;;  %v927_v52 = vpack.c.bf16 %v905_v45, %v904_v49  ;;  %v848_v56 = vadd.f32 %v3621_v46, %v4939_v41 }
 0x1b3   : > { %v839_v50 = vpop.f32.mrf.mxu0 }
 0x1b4   : > { %v926_v51 = vpack.c.bf16 %v903_v48, %v902_v47  ;;  %v840_v54 = vadd.f32 %v4939_v41, %v839_v50  ;;  %v908_v62 = vmax.f32 %v848_v56, 0.0 }
 0x1b5   : > { %v3622_v53 = vpop.f32.mrf.mxu0 }
 0x1b6   : > { %v851_v55 = vadd.f32 %v3622_v53, %v4939_v41  ;;  %3663 = vmatprep.mubr.bf16.mxu1 %v926_v51  ;;  %v906_v60 = vmax.f32 %v840_v54, 0.0 }
 0x1b7   : > { %v842_v57 = vpop.f32.mrf.mxu0  ;;  %3664 = vmatmul.mubr.bf16.gmra.mxu1 %v927_v52 }
 0x1b8   : > { %v843_v35 = vadd.f32 %v4939_v41, %v842_v57  ;;  %3931 = vmatpush3.bf16.xpose.msra.mxu1 %v4921_v36  ;;  %v909_v58 = vmax.f32 %v851_v55, 0.0 }
 0x1b9   : > { %v3625_v59 = vpop.f32.mrf.mxu0  ;;  %3924 = vmatprep.subr.bf16.mxu1 %v4926_v37 }
 0x1ba   : > { %v907_v61 = vmax.f32 %v843_v35, 0.0  ;;  %v929_v1 = vpack.c.bf16 %v909_v58, %v908_v62  ;;  %v864_v5 = vadd.f32 %v3625_v59, %v4939_v41 }
 0x1bb   : > { %v855_v63 = vpop.f32.mrf.mxu0 }
 0x1bc   : > { %v928_v0 = vpack.c.bf16 %v907_v61, %v906_v60  ;;  %v856_v3 = vadd.f32 %v4939_v41, %v855_v63  ;;  %v912_v11 = vmax.f32 %v864_v5, 0.0 }
 0x1bd   : > { %v3626_v2 = vpop.f32.mrf.mxu0 }
 0x1be   : > { %v867_v4 = vadd.f32 %v3626_v2, %v4939_v41  ;;  %3667 = vmatprep.mubr.bf16.mxu1 %v928_v0  ;;  %v910_v9 = vmax.f32 %v856_v3, 0.0 }
 0x1bf   : > { %v858_v6 = vpop.f32.mrf.mxu0  ;;  %3668 = vmatmul.mubr.bf16.gmra.mxu1 %v929_v1 }
 0x1c0   : > { %v859_v36 = vadd.f32 %v4939_v41, %v858_v6  ;;  %3932 = vmatpush3.bf16.xpose.msra.mxu1 %v4926_v37  ;;  %v913_v7 = vmax.f32 %v867_v4, 0.0 }
 0x1c1   : > { %v3629_v8 = vpop.f32.mrf.mxu0  ;;  %3925 = vmatprep.subr.bf16.mxu1 %v4931_v38 }
 0x1c2   : > { %v911_v10 = vmax.f32 %v859_v36, 0.0  ;;  %v931_v14 = vpack.c.bf16 %v913_v7, %v912_v11  ;;  %v880_v18 = vadd.f32 %v3629_v8, %v4939_v41 }
 0x1c3   : > { %v871_v12 = vpop.f32.mrf.mxu0 }
 0x1c4   : > { %v930_v13 = vpack.c.bf16 %v911_v10, %v910_v9  ;;  %v872_v16 = vadd.f32 %v4939_v41, %v871_v12  ;;  %v916_v23 = vmax.f32 %v880_v18, 0.0 }
 0x1c5   : > { %v3630_v15 = vpop.f32.mrf.mxu0 }
 0x1c6   : > { %v883_v17 = vadd.f32 %v3630_v15, %v4939_v41  ;;  %3671 = vmatprep.mubr.bf16.mxu1 %v930_v13  ;;  %v914_v21 = vmax.f32 %v872_v16, 0.0 }
 0x1c7   : > { %v874_v37 = vpop.f32.mrf.mxu0  ;;  %3672 = vmatmul.mubr.bf16.gmra.mxu1 %v931_v14 }
 0x1c8   : > { %v875_v19 = vadd.f32 %v4939_v41, %v874_v37  ;;  %3933 = vmatpush3.bf16.xpose.msra.mxu1 %v4931_v38  ;;  %v917_v20 = vmax.f32 %v883_v17, 0.0  ;;  %v4989_v41 = vld [vmem:[%s5581_s20 + $0x1] ss:$0 sm:$0xff] }
 0x1c9   : > { %3926 = vmatprep.subr.bf16.mxu1 %v4101_v26 }
 0x1ca   : > { %v915_v22 = vmax.f32 %v875_v19, 0.0  ;;  %v933_v25 = vpack.c.bf16 %v917_v20, %v916_v23 }
 0x1cc   : > { %v932_v24 = vpack.c.bf16 %v915_v22, %v914_v21 }
 0x1ce   : > { %3675 = vmatprep.mubr.bf16.mxu1 %v932_v24 }
 0x1cf   : > { %3676 = vmatmul.mubr.bf16.gmra.mxu1 %v933_v25 }
 0x1d0   : > { %3934 = vmatpush3.bf16.xpose.msra.mxu1 %v4101_v26 }
 0x257   : > { %v3649_v27 = vpop.f32.mrf.mxu1 }
 0x258   : > { %v1047_v31 = vadd.f32 %v3649_v27, %v4989_v41 }
 0x259   : > { %v1038_v28 = vpop.f32.mrf.mxu1 }
 0x25a   : > { %v1039_v29 = vadd.f32 %v4989_v41, %v1038_v28  ;;  %v1167_v44 = vmax.f32 %v1047_v31, 0.0 }
 0x25b   : > { %v3650_v38 = vpop.f32.mrf.mxu1 }
 0x25c   : > { %v1050_v30 = vadd.f32 %v3650_v38, %v4989_v41  ;;  %v1165_v42 = vmax.f32 %v1039_v29, 0.0 }
 0x25d   : > { %v1041_v32 = vpop.f32.mrf.mxu1 }
 0x25e   : > { %v1042_v33 = vadd.f32 %v4989_v41, %v1041_v32  ;;  %v1168_v39 = vmax.f32 %v1050_v30, 0.0 }
 0x25f   : > { %v3653_v40 = vpop.f32.mrf.mxu1 }
 0x260   : > { %v1166_v43 = vmax.f32 %v1042_v33, 0.0  ;;  %v1198_v46 = vpack.c.bf16 %v1168_v39, %v1167_v44  ;;  %v1063_v50 = vadd.f32 %v3653_v40, %v4989_v41 }
 0x261   : > { %v1054_v34 = vpop.f32.mrf.mxu1 }
 0x262   : > { %v1197_v45 = vpack.c.bf16 %v1166_v43, %v1165_v42  ;;  %v1055_v48 = vadd.f32 %v4989_v41, %v1054_v34  ;;  %v1171_v57 = vmax.f32 %v1063_v50, 0.0 }
 0x263   : > { %v3654_v47 = vpop.f32.mrf.mxu1 }
 0x264   : > { %v1066_v49 = vadd.f32 %v3654_v47, %v4989_v41  ;;  %3695 = vmatprep.mubr.bf16.mxu0 %v1197_v45  ;;  %v1169_v55 = vmax.f32 %v1055_v48, 0.0 }
 0x265   : > { %v1057_v51 = vpop.f32.mrf.mxu1  ;;  %3696 = vmatmul.mubr.bf16.vlgmr.msra.gmra.mxu0 %v1198_v46 }
 0x266   : > { %v1058_v52 = vadd.f32 %v4989_v41, %v1057_v51  ;;  %v1172_v53 = vmax.f32 %v1066_v49, 0.0 }
 0x267   : > { %v3657_v54 = vpop.f32.mrf.mxu1 }
 0x268   : > { %v1170_v56 = vmax.f32 %v1058_v52, 0.0  ;;  %v1200_v59 = vpack.c.bf16 %v1172_v53, %v1171_v57  ;;  %v1079_v63 = vadd.f32 %v3657_v54, %v4989_v41 }
 0x269   : > { %v1070_v35 = vpop.f32.mrf.mxu1 }
 0x26a   : > { %v1199_v58 = vpack.c.bf16 %v1170_v56, %v1169_v55  ;;  %v1071_v61 = vadd.f32 %v4989_v41, %v1070_v35  ;;  %v1175_v6 = vmax.f32 %v1079_v63, 0.0 }
 0x26b   : > { %v3658_v60 = vpop.f32.mrf.mxu1 }
 0x26c   : > { %v1082_v62 = vadd.f32 %v3658_v60, %v4989_v41  ;;  %3699 = vmatprep.mubr.bf16.mxu0 %v1199_v58  ;;  %v1173_v4 = vmax.f32 %v1071_v61, 0.0 }
 0x26d   : > { %v1073_v0 = vpop.f32.mrf.mxu1  ;;  %3700 = vmatmul.mubr.bf16.gmra.mxu0 %v1200_v59 }
 0x26e   : > { %v1074_v1 = vadd.f32 %v4989_v41, %v1073_v0  ;;  %v1176_v2 = vmax.f32 %v1082_v62, 0.0 }
 0x26f   : > { %v3661_v3 = vpop.f32.mrf.mxu1 }
 0x270   : > { %v1174_v5 = vmax.f32 %v1074_v1, 0.0  ;;  %v1202_v8 = vpack.c.bf16 %v1176_v2, %v1175_v6  ;;  %v1095_v12 = vadd.f32 %v3661_v3, %v4989_v41 }
 0x271   : > { %v1086_v36 = vpop.f32.mrf.mxu1 }
 0x272   : > { %v1201_v7 = vpack.c.bf16 %v1174_v5, %v1173_v4  ;;  %v1087_v10 = vadd.f32 %v4989_v41, %v1086_v36  ;;  %v1179_v37 = vmax.f32 %v1095_v12, 0.0 }
 0x273   : > { %v3662_v9 = vpop.f32.mrf.mxu1 }
 0x274   : > { %v1098_v11 = vadd.f32 %v3662_v9, %v4989_v41  ;;  %3703 = vmatprep.mubr.bf16.mxu0 %v1201_v7  ;;  %v1177_v17 = vmax.f32 %v1087_v10, 0.0 }
 0x275   : > { %v1089_v13 = vpop.f32.mrf.mxu1  ;;  %3704 = vmatmul.mubr.bf16.gmra.mxu0 %v1202_v8 }
 0x276   : > { %v1090_v14 = vadd.f32 %v4989_v41, %v1089_v13  ;;  %v1180_v15 = vmax.f32 %v1098_v11, 0.0 }
 0x277   : > { %v3665_v16 = vpop.f32.mrf.mxu1 }
 0x278   : > { %v1178_v18 = vmax.f32 %v1090_v14, 0.0  ;;  %v1204_v21 = vpack.c.bf16 %v1180_v15, %v1179_v37  ;;  %v1111_v25 = vadd.f32 %v3665_v16, %v4989_v41  ;;  %v5026_v14 = vld [vmem:[%s5581_s20 + $0x4] ss:$0 sm:$0xff] }
 0x279   : > { %v1102_v19 = vpop.f32.mrf.mxu1 }
 0x27a   : > { %v1203_v20 = vpack.c.bf16 %v1178_v18, %v1177_v17  ;;  %v1103_v23 = vadd.f32 %v4989_v41, %v1102_v19  ;;  %v1183_v31 = vmax.f32 %v1111_v25, 0.0 }
 0x27b   : > { %v3666_v22 = vpop.f32.mrf.mxu1 }
 0x27c   : > { %v1114_v24 = vadd.f32 %v3666_v22, %v4989_v41  ;;  %3707 = vmatprep.mubr.bf16.mxu0 %v1203_v20  ;;  %v1181_v29 = vmax.f32 %v1103_v23, 0.0 }
 0x27d   : > { %v1105_v26 = vpop.f32.mrf.mxu1  ;;  %3708 = vmatmul.mubr.bf16.gmra.mxu0 %v1204_v21 }
 0x27e   : > { %v1106_v27 = vadd.f32 %v4989_v41, %v1105_v26  ;;  %v1184_v28 = vmax.f32 %v1114_v24, 0.0 }
 0x27f   : > { %v3669_v38 = vpop.f32.mrf.mxu1 }
 0x280   : > { %v1182_v30 = vmax.f32 %v1106_v27, 0.0  ;;  %v1206_v39 = vpack.c.bf16 %v1184_v28, %v1183_v31  ;;  %v1127_v44 = vadd.f32 %v3669_v38, %v4989_v41 }
 0x281   : > { %v1118_v32 = vpop.f32.mrf.mxu1 }
 0x282   : > { %v1205_v33 = vpack.c.bf16 %v1182_v30, %v1181_v29  ;;  %v1119_v42 = vadd.f32 %v4989_v41, %v1118_v32  ;;  %v1187_v50 = vmax.f32 %v1127_v44, 0.0 }
 0x283   : > { %v3670_v40 = vpop.f32.mrf.mxu1 }
 0x284   : > { %v1130_v43 = vadd.f32 %v3670_v40, %v4989_v41  ;;  %3711 = vmatprep.mubr.bf16.mxu1 %v1205_v33  ;;  %v1185_v48 = vmax.f32 %v1119_v42, 0.0 }
 0x285   : > { %v1121_v34 = vpop.f32.mrf.mxu1  ;;  %3712 = vmatmul.mubr.bf16.vlgmr.msra.gmra.mxu1 %v1206_v39 }
 0x286   : > { %v1122_v45 = vadd.f32 %v4989_v41, %v1121_v34  ;;  %v1188_v46 = vmax.f32 %v1130_v43, 0.0 }
 0x287   : > { %v3673_v47 = vpop.f32.mrf.mxu1 }
 0x288   : > { %v1186_v49 = vmax.f32 %v1122_v45, 0.0  ;;  %v1208_v53 = vpack.c.bf16 %v1188_v46, %v1187_v50  ;;  %v1143_v57 = vadd.f32 %v3673_v47, %v4989_v41 }
 0x289   : > { %v1134_v51 = vpop.f32.mrf.mxu1 }
 0x28a   : > { %v1207_v52 = vpack.c.bf16 %v1186_v49, %v1185_v48  ;;  %v1135_v55 = vadd.f32 %v4989_v41, %v1134_v51  ;;  %v1191_v63 = vmax.f32 %v1143_v57, 0.0 }
 0x28b   : > { %v3674_v54 = vpop.f32.mrf.mxu1 }
 0x28c   : > { %v1146_v56 = vadd.f32 %v3674_v54, %v4989_v41  ;;  %3715 = vmatprep.mubr.bf16.mxu1 %v1207_v52  ;;  %v1189_v61 = vmax.f32 %v1135_v55, 0.0 }
 0x28d   : > { %v1137_v35 = vpop.f32.mrf.mxu1  ;;  %3716 = vmatmul.mubr.bf16.gmra.mxu1 %v1208_v53 }
 0x28e   : > { %v1138_v58 = vadd.f32 %v4989_v41, %v1137_v35  ;;  %v1192_v59 = vmax.f32 %v1146_v56, 0.0 }
 0x28f   : > { %v3677_v60 = vpop.f32.mrf.mxu1 }
 0x290   : > { %v1190_v62 = vmax.f32 %v1138_v58, 0.0  ;;  %v1210_v2 = vpack.c.bf16 %v1192_v59, %v1191_v63  ;;  %v1159_v6 = vadd.f32 %v3677_v60, %v4989_v41 }
 0x291   : > { %v1150_v0 = vpop.f32.mrf.mxu1 }
 0x292   : > { %v1209_v1 = vpack.c.bf16 %v1190_v62, %v1189_v61  ;;  %v1151_v4 = vadd.f32 %v4989_v41, %v1150_v0  ;;  %v1195_v11 = vmax.f32 %v1159_v6, 0.0 }
 0x293   : > { %v3678_v3 = vpop.f32.mrf.mxu1 }
 0x294   : > { %v1162_v5 = vadd.f32 %v3678_v3, %v4989_v41  ;;  %3719 = vmatprep.mubr.bf16.mxu1 %v1209_v1  ;;  %v1193_v9 = vmax.f32 %v1151_v4, 0.0 }
 0x295   : > { %v1153_v36 = vpop.f32.mrf.mxu1  ;;  %3720 = vmatmul.mubr.bf16.gmra.mxu1 %v1210_v2 }
 0x296   : > { %v1154_v7 = vadd.f32 %v4989_v41, %v1153_v36  ;;  %v1196_v8 = vmax.f32 %v1162_v5, 0.0 }
 0x298   : > { %v1194_v10 = vmax.f32 %v1154_v7, 0.0  ;;  %v1212_v13 = vpack.c.bf16 %v1196_v8, %v1195_v11 }
 0x29a   : > { %v1211_v12 = vpack.c.bf16 %v1194_v10, %v1193_v9 }
 0x29c   : > { %3723 = vmatprep.mubr.bf16.mxu1 %v1211_v12 }
 0x29d   : > { %3724 = vmatmul.mubr.bf16.gmra.mxu1 %v1212_v13 }
 0x325   : > { %v3697_v15 = vpop.f32.mrf.mxu0 }
 0x326   : > { %v5029_v16 = vadd.f32 %v3697_v15, %v5026_v14 }
 0x327   : > { %v1317_v17 = vpop.f32.mrf.mxu0 }
 0x328   : > { %v5032_v41 = vadd.f32 %v5026_v14, %v1317_v17  ;;  %1448 = vmax.xlane.f32.xlu1 %v5029_v16  ;;  %v4102_v17 = vld [vmem:[%s4875_s5 + $0x38] sm:$0xff]  }
 0x329   : > { %v3698_v18 = vpop.f32.mrf.mxu0  ;;  %3727 = vmatprep.subr.bf16.mxu1 %v4102_v17 }
 0x32a   : > { %v5036_v37 = vadd.f32 %v3698_v18, %v5026_v14  ;;  %1444 = vmax.xlane.f32.xlu0 %v5032_v41  ;;  %v4103_v18 = vld [vmem:[%s4875_s5 + $0x30] sm:$0xff]   ;;  %3728 = vmatpush3.bf16.msra.mxu1 %v4102_v17 }
 0x32b   : > { %v1320_v19 = vpop.f32.mrf.mxu0  ;;  %3729 = vmatprep.subr.bf16.mxu1 %v4103_v18 }
 0x32c   : > { %v5040_v20 = vadd.f32 %v5026_v14, %v1320_v19  ;;  %1450 = vmax.xlane.f32.xlu1 %v5036_v37 }
 0x32d   : > { %v3701_v21 = vpop.f32.mrf.mxu0 }
 0x32e   : > { %1446 = vmax.xlane.f32.xlu0 %v5040_v20  ;;  %v5049_v26 = vadd.f32 %v3701_v21, %v5026_v14  ;;  %3730 = vmatpush3.bf16.msra.mxu1 %v4103_v18 }
 0x32f   : > { %v1333_v22 = vpop.f32.mrf.mxu0 }
 0x330   : > { %v5045_v23 = vadd.f32 %v5026_v14, %v1333_v22 }
 0x331   : > { %v3702_v24 = vpop.f32.mrf.mxu0 }
 0x332   : > { %1452 = vmax.xlane.f32.xlu0 %v5045_v23  ;;  %v5057_v29 = vadd.f32 %v3702_v24, %v5026_v14 }
 0x333   : > { %v1336_v25 = vpop.f32.mrf.mxu0 }
 0x334   : > { %v5052_v27 = vadd.f32 %v5026_v14, %v1336_v25 }
 0x335   : > { %v3705_v28 = vpop.f32.mrf.mxu0 }
 0x336   : > { %1454 = vmax.xlane.f32.xlu1 %v5052_v27  ;;  %1456 = vmax.xlane.f32.xlu0 %v5049_v26  ;;  %v5065_v33 = vadd.f32 %v3705_v28, %v5026_v14 }
 0x337   : > { %v1349_v38 = vpop.f32.mrf.mxu0 }
 0x338   : > { %v5060_v30 = vadd.f32 %v5026_v14, %v1349_v38 }
 0x339   : > { %v3706_v31 = vpop.f32.mrf.mxu0 }
 0x33a   : > { %1458 = vmax.xlane.f32.xlu1 %v5057_v29  ;;  %1460 = vmax.xlane.f32.xlu0 %v5060_v30  ;;  %v5073_v43 = vadd.f32 %v3706_v31, %v5026_v14 }
 0x33b   : > { %v1352_v32 = vpop.f32.mrf.mxu0 }
 0x33c   : > { %v5068_v39 = vadd.f32 %v5026_v14, %v1352_v32 }
 0x33d   : > { %v3709_v40 = vpop.f32.mrf.mxu0 }
 0x33e   : > { %1462 = vmax.xlane.f32.xlu1 %v5068_v39  ;;  %1464 = vmax.xlane.f32.xlu0 %v5065_v33  ;;  %v5081_v46 = vadd.f32 %v3709_v40, %v5026_v14 }
 0x33f   : > { %v1365_v42 = vpop.f32.mrf.mxu0 }
 0x340   : > { %v5076_v44 = vadd.f32 %v5026_v14, %v1365_v42 }
 0x341   : > { %v3710_v34 = vpop.f32.mrf.mxu0 }
 0x342   : > { %1466 = vmax.xlane.f32.xlu1 %v5073_v43  ;;  %1468 = vmax.xlane.f32.xlu0 %v5076_v44  ;;  %v5089_v50 = vadd.f32 %v3710_v34, %v5026_v14 }
 0x343   : > { %v1368_v45 = vpop.f32.mrf.mxu0 }
 0x344   : > { %v5084_v47 = vadd.f32 %v5026_v14, %v1368_v45 }
 0x345   : > { %v3713_v48 = vpop.f32.mrf.mxu1 }
 0x346   : > { %1470 = vmax.xlane.f32.xlu1 %v5084_v47  ;;  %1472 = vmax.xlane.f32.xlu0 %v5081_v46  ;;  %v5097_v54 = vadd.f32 %v3713_v48, %v5026_v14 }
 0x347   : > { %v1381_v49 = vpop.f32.mrf.mxu1 }
 0x348   : > { %v5092_v51 = vadd.f32 %v5026_v14, %v1381_v49 }
 0x349   : > { %v3714_v52 = vpop.f32.mrf.mxu1 }
 0x34a   : > { %1474 = vmax.xlane.f32.xlu1 %v5089_v50  ;;  %1476 = vmax.xlane.f32.xlu0 %v5092_v51  ;;  %v5105_v35 = vadd.f32 %v3714_v52, %v5026_v14 }
 0x34b   : > { %v1384_v53 = vpop.f32.mrf.mxu1 }
 0x34c   : > { %v5100_v55 = vadd.f32 %v5026_v14, %v1384_v53 }
 0x34d   : > { %v3717_v56 = vpop.f32.mrf.mxu1 }
 0x34e   : > { %1478 = vmax.xlane.f32.xlu1 %v5100_v55  ;;  %1480 = vmax.xlane.f32.xlu0 %v5097_v54  ;;  %v5113_v61 = vadd.f32 %v3717_v56, %v5026_v14 }
 0x34f   : > { %v1397_v57 = vpop.f32.mrf.mxu1 }
 0x350   : > { %v5108_v58 = vadd.f32 %v5026_v14, %v1397_v57 }
 0x351   : > { %v3718_v59 = vpop.f32.mrf.mxu1 }
 0x352   : > { %1482 = vmax.xlane.f32.xlu1 %v5105_v35  ;;  %1484 = vmax.xlane.f32.xlu0 %v5108_v58  ;;  %v5121_v1 = vadd.f32 %v3718_v59, %v5026_v14 }
 0x353   : > { %v1400_v60 = vpop.f32.mrf.mxu1 }
 0x354   : > { %v5116_v62 = vadd.f32 %v5026_v14, %v1400_v60 }
 0x355   : > { %v3721_v63 = vpop.f32.mrf.mxu1 }
 0x356   : > { %1486 = vmax.xlane.f32.xlu1 %v5116_v62  ;;  %1488 = vmax.xlane.f32.xlu0 %v5113_v61  ;;  %v5129_v5 = vadd.f32 %v3721_v63, %v5026_v14 }
 0x357   : > { %v1413_v0 = vpop.f32.mrf.mxu1 }
 0x358   : > { %v5124_v2 = vadd.f32 %v5026_v14, %v1413_v0 }
 0x359   : > { %v3722_v3 = vpop.f32.mrf.mxu1 }
 0x35a   : > { %1490 = vmax.xlane.f32.xlu1 %v5121_v1  ;;  %1492 = vmax.xlane.f32.xlu0 %v5124_v2  ;;  %v5137_v8 = vadd.f32 %v3722_v3, %v5026_v14 }
 0x35b   : > { %v1416_v4 = vpop.f32.mrf.mxu1 }
 0x35c   : > { %v5132_v6 = vadd.f32 %v5026_v14, %v1416_v4 }
 0x35d   : > { %v3725_v36 = vpop.f32.mrf.mxu1 }
 0x35e   : > { %1494 = vmax.xlane.f32.xlu1 %v5132_v6  ;;  %1496 = vmax.xlane.f32.xlu0 %v5129_v5  ;;  %v5145_v12 = vadd.f32 %v3725_v36, %v5026_v14 }
 0x35f   : > { %v1429_v7 = vpop.f32.mrf.mxu1 }
 0x360   : > { %v5140_v9 = vadd.f32 %v5026_v14, %v1429_v7 }
 0x361   : > { %v3726_v10 = vpop.f32.mrf.mxu1 }
 0x362   : > { %1498 = vmax.xlane.f32.xlu1 %v5137_v8  ;;  %1500 = vmax.xlane.f32.xlu0 %v5140_v9  ;;  %v5153_v15 = vadd.f32 %v3726_v10, %v5026_v14 }
 0x363   : > { %v1432_v11 = vpop.f32.mrf.mxu1 }
 0x364   : > { %v5148_v13 = vadd.f32 %v5026_v14, %v1432_v11 }
 0x366   : > { %1502 = vmax.xlane.f32.xlu1 %v5148_v13  ;;  %1504 = vmax.xlane.f32.xlu0 %v5145_v12 }
 0x36a   : > { %1506 = vmax.xlane.f32.xlu1 %v5153_v15 }
 0x3b1   : > { %v1449_v19 = vpop.xlane.xlu1 %1448 }
 0x3b2   : > { %v1510_v21 = vsub.f32 %v5029_v16, %v1449_v19 }
 0x3b3   : > { %v1445_v22 = vpop.xlane.xlu0 %1444 }
 0x3b4   : > { %v1508_v24 = vsub.f32 %v5032_v41, %v1445_v22  ;;  %v1544_v38 = vmul.f32 1.442695, %v1510_v21 }
 0x3b5   : > { %v1451_v25 = vpop.xlane.xlu1 %1450 }
 0x3b6   : > { %v1540_v28 = vmul.f32 1.442695, %v1508_v24  ;;  %v1511_v14 = vsub.f32 %v5036_v37, %v1451_v25 }
 0x3b7   : > { %v1447_v31 = vpop.xlane.xlu0 %1446 }
 0x3b8   : > { %4134 = vpow2.f32 %v1540_v28  ;;  %v1509_v32 = vsub.f32 %v5040_v20, %v1447_v31  ;;  %v1546_v42 = vmul.f32 1.442695, %v1511_v14  ;;  %v4104_v28 = vld [vmem:[%s4875_s5 + $0x28] sm:$0xff]  }
 0x3b9   : > { %4136 = vpow2.f32 %v1544_v38  ;;  %3731 = vmatprep.subr.bf16.mxu1 %v4104_v28 }
 0x3ba   : > { %v1542_v40 = vmul.f32 1.442695, %v1509_v32  ;;  %3732 = vmatpush3.bf16.msra.mxu1 %v4104_v28 }
 0x3bb   : > { %v1453_v34 = vpop.xlane.xlu0 %1452 }
 0x3bc   : > { %4138 = vpow2.f32 %v1542_v40  ;;  %v1512_v45 = vsub.f32 %v5045_v23, %v1453_v34 }
 0x3bd   : > { %4140 = vpow2.f32 %v1546_v42  ;;  %v4105_v42 = vld [vmem:[%s4875_s5 + $0x20] sm:$0xff]  }
 0x3be   : > { %v1548_v16 = vmul.f32 1.442695, %v1512_v45  ;;  %3733 = vmatprep.subr.bf16.mxu1 %v4105_v42 }
 0x3bf   : > { %v1455_v48 = vpop.xlane.xlu1 %1454  ;;  %v1457_v41 = vpop.xlane.xlu0 %1456  ;;  %3734 = vmatpush3.bf16.msra.mxu1 %v4105_v42 }
 0x3c0   : > { %4142 = vpow2.f32 %v1548_v16  ;;  %v1513_v49 = vsub.f32 %v5052_v27, %v1455_v48  ;;  %v1514_v37 = vsub.f32 %v5049_v26, %v1457_v41 }
 0x3c2   : > { %v1550_v52 = vmul.f32 1.442695, %v1513_v49  ;;  %v1552_v53 = vmul.f32 1.442695, %v1514_v37  ;;  %v4106_v37 = vld [vmem:[%s4875_s5 + $0x18] sm:$0xff]  }
 0x3c3   : > { %v1459_v56 = vpop.xlane.xlu1 %1458  ;;  %v1461_v20 = vpop.xlane.xlu0 %1460  ;;  %3735 = vmatprep.subr.bf16.mxu1 %v4106_v37 }
 0x3c4   : > { %4144 = vpow2.f32 %v1550_v52  ;;  %v1515_v57 = vsub.f32 %v5057_v29, %v1459_v56  ;;  %v1516_v59 = vsub.f32 %v5060_v30, %v1461_v20  ;;  %3736 = vmatpush3.bf16.msra.mxu1 %v4106_v37 }
 0x3c5   : > { %v5167_v60 = vpop.eup %4134  ;;  %4146 = vpow2.f32 %v1552_v53 }
 0x3c6   : > { %v1554_v23 = vmul.f32 1.442695, %v1515_v57  ;;  %v1556_v63 = vmul.f32 1.442695, %v1516_v59  ;;  %1604 = vadd.xlane.f32.xlu0 %v5167_v60  ;;  %v5170_v3 = vpop.eup %4136 }
 0x3c7   : > { %v1463_v0 = vpop.xlane.xlu1 %1462  ;;  %v1465_v27 = vpop.xlane.xlu0 %1464 }
 0x3c8   : > { %4148 = vpow2.f32 %v1554_v23  ;;  %v1517_v26 = vsub.f32 %v5068_v39, %v1463_v0  ;;  %v1518_v4 = vsub.f32 %v5065_v33, %v1465_v27  ;;  %v4107_v23 = vld [vmem:[%s4875_s5 + $0x10] sm:$0xff]  }
 0x3c9   : > { %v5174_v36 = vpop.eup %4138  ;;  %4150 = vpow2.f32 %v1556_v63  ;;  %3737 = vmatprep.subr.bf16.mxu1 %v4107_v23 }
 0x3ca   : > { %v1558_v29 = vmul.f32 1.442695, %v1517_v26  ;;  %v1560_v30 = vmul.f32 1.442695, %v1518_v4  ;;  %1608 = vadd.xlane.f32.xlu0 %v5170_v3  ;;  %1606 = vadd.xlane.f32.xlu1 %v5174_v36  ;;  %v5178_v11 = vpop.eup %4140 }
 0x3cb   : > { %v1467_v7 = vpop.xlane.xlu1 %1466  ;;  %v1469_v10 = vpop.xlane.xlu0 %1468  ;;  %3738 = vmatpush3.bf16.msra.mxu1 %v4107_v23 }
 0x3cc   : > { %4152 = vpow2.f32 %v1558_v29  ;;  %v1519_v17 = vsub.f32 %v5073_v43, %v1467_v7  ;;  %v1520_v39 = vsub.f32 %v5076_v44, %v1469_v10 }
 0x3cd   : > { %v5182_v33 = vpop.eup %4142  ;;  %4154 = vpow2.f32 %v1560_v30  ;;  %v4108_v30 = vld [vmem:[%s4875_s5 + $0x8] sm:$0xff]  }
 0x3ce   : > { %v1562_v18 = vmul.f32 1.442695, %v1519_v17  ;;  %v1564_v19 = vmul.f32 1.442695, %v1520_v39  ;;  %1610 = vadd.xlane.f32.xlu1 %v5178_v11  ;;  %1612 = vadd.xlane.f32.xlu0 %v5182_v33 }
 0x3cf   : > { %v1471_v21 = vpop.xlane.xlu1 %1470  ;;  %v1473_v22 = vpop.xlane.xlu0 %1472  ;;  %3739 = vmatprep.subr.bf16.mxu1 %v4108_v30 }
 0x3d0   : > { %4156 = vpow2.f32 %v1562_v18  ;;  %v1521_v24 = vsub.f32 %v5084_v47, %v1471_v21  ;;  %v1522_v25 = vsub.f32 %v5081_v46, %v1473_v22  ;;  %3740 = vmatpush3.bf16.msra.mxu1 %v4108_v30  ;;  %v4109_v21 = vld [vmem:[%s4875_s5] sm:$0xff]   ;;  %v4111_v30 = vld [vmem:[#allocation11 + $0x30] sm:$0xff]   ;;  %s4492_s5 = scalar_lea.vmem %s5469_s3, 2048 }
 0x3d1   : > { %v5189_v43 = vpop.eup %4144  ;;  %4158 = vpow2.f32 %v1564_v19  ;;  %3741 = vmatprep.subr.bf16.mxu1 %v4109_v21  ;;  %p4493_p11 = scmp.ne.s32.totalorder %s5469_s3, %s4492_s5  ;;  %p4500_p2 = scmp.lt.s32.totalorder %s4498_s30, %s4492_s5 }
 0x3d2   : > { %v5191_v44 = vpop.eup %4146  ;;  %v1566_v38 = vmul.f32 1.442695, %v1521_v24  ;;  %v1568_v14 = vmul.f32 1.442695, %v1522_v25  ;;  %1614 = vadd.xlane.f32.xlu1 %v5189_v43 }
 0x3d3   : > { %1616 = vadd.xlane.f32.xlu0 %v5191_v44  ;;  %v1475_v31 = vpop.xlane.xlu1 %1474  ;;  %v1477_v32 = vpop.xlane.xlu0 %1476  ;;  %p4494_p8 = pnand %p4493_p11, %p4749_p13  ;;  %p4501_p7 = por %p4500_p2, %p4499_p10 }
 0x3d4   : > { %4160 = vpow2.f32 %v1566_v38  ;;  %v1523_v46 = vsub.f32 %v5089_v50, %v1475_v31  ;;  %v1524_v47 = vsub.f32 %v5092_v51, %v1477_v32  ;;  %3742 = vmatpush3.bf16.msra.mxu1 %v4109_v21 }
 0x3d5   : > { %v5197_v40 = vpop.eup %4148  ;;  %4162 = vpow2.f32 %v1568_v14  ;;  %p4495_p6 = pneg %p4494_p8 }
 0x3d6   : > { %v5200_v34 = vpop.eup %4150  ;;  %v1570_v45 = vmul.f32 1.442695, %v1523_v46  ;;  %v1572_v16 = vmul.f32 1.442695, %v1524_v47  ;;  %1618 = vadd.xlane.f32.xlu1 %v5197_v40 }
 0x3d7   : > { %1620 = vadd.xlane.f32.xlu0 %v5200_v34  ;;  %v1479_v48 = vpop.xlane.xlu1 %1478  ;;  %v1481_v41 = vpop.xlane.xlu0 %1480  ;;  %p4502_p3 = pnand %p4501_p7, %p4495_p6 }
 0x3d8   : > { %4164 = vpow2.f32 %v1570_v45  ;;  %v1525_v50 = vsub.f32 %v5100_v55, %v1479_v48  ;;  %v1526_v51 = vsub.f32 %v5097_v54, %v1481_v41 }
 0x3d9   : > { %v5206_v49 = vpop.eup %4152  ;;  %4166 = vpow2.f32 %v1572_v16 }
 0x3da   : > { %v5209_v52 = vpop.eup %4154  ;;  %v1574_v53 = vmul.f32 1.442695, %v1525_v50  ;;  %v1576_v56 = vmul.f32 1.442695, %v1526_v51  ;;  %1622 = vadd.xlane.f32.xlu1 %v5206_v49 }
 0x3db   : > { %1624 = vadd.xlane.f32.xlu0 %v5209_v52  ;;  %v1483_v20 = vpop.xlane.xlu1 %1482  ;;  %v1485_v57 = vpop.xlane.xlu0 %1484 }
 0x3dc   : > { %4168 = vpow2.f32 %v1574_v53  ;;  %v1527_v54 = vsub.f32 %v5105_v35, %v1483_v20  ;;  %v1528_v55 = vsub.f32 %v5108_v58, %v1485_v57 }
 0x3dd   : > { %v5215_v59 = vpop.eup %4156  ;;  %4170 = vpow2.f32 %v1576_v56 }
 0x3de   : > { %v5218_v63 = vpop.eup %4158  ;;  %v1578_v0 = vmul.f32 1.442695, %v1527_v54  ;;  %v1580_v27 = vmul.f32 1.442695, %v1528_v55  ;;  %1626 = vadd.xlane.f32.xlu1 %v5215_v59 }
 0x3df   : > { %1628 = vadd.xlane.f32.xlu0 %v5218_v63  ;;  %v1487_v26 = vpop.xlane.xlu1 %1486  ;;  %v1489_v4 = vpop.xlane.xlu0 %1488 }
 0x3e0   : > { %4172 = vpow2.f32 %v1578_v0  ;;  %v1529_v35 = vsub.f32 %v5116_v62, %v1487_v26  ;;  %v1530_v58 = vsub.f32 %v5113_v61, %v1489_v4 }
 0x3e1   : > { %v5224_v29 = vpop.eup %4160  ;;  %4174 = vpow2.f32 %v1580_v27 }
 0x3e2   : > { %v5227_v7 = vpop.eup %4162  ;;  %v1582_v10 = vmul.f32 1.442695, %v1529_v35  ;;  %v1584_v17 = vmul.f32 1.442695, %v1530_v58  ;;  %1630 = vadd.xlane.f32.xlu1 %v5224_v29  ;;  %v4110_v58 = vld [vmem:[#allocation11 + $0x38] sm:$0xff]  }
 0x3e3   : > { %1632 = vadd.xlane.f32.xlu0 %v5227_v7  ;;  %v1491_v39 = vpop.xlane.xlu1 %1490  ;;  %v1493_v18 = vpop.xlane.xlu0 %1492  ;;  %3775 = vmatprep.subr.bf16.mxu0 %v4110_v58 }
 0x3e4   : > { %4176 = vpow2.f32 %v1582_v10  ;;  %v1531_v61 = vsub.f32 %v5121_v1, %v1491_v39  ;;  %v1532_v62 = vsub.f32 %v5124_v2, %v1493_v18  ;;  %3776 = vmatpush3.bf16.msra.mxu0 %v4110_v58  ;;  %v4112_v10 = vld [vmem:[#allocation11 + $0x28] sm:$0xff]   ;;  %v4114_v39 = vld [vmem:[#allocation11 + $0x18] sm:$0xff]   ;;  %v4115_v18 = vld [vmem:[#allocation11 + $0x10] sm:$0xff]  }
 0x3e5   : > { %v5233_v19 = vpop.eup %4164  ;;  %4178 = vpow2.f32 %v1584_v17  ;;  %3777 = vmatprep.subr.bf16.mxu0 %v4111_v30  ;;  %v4113_v17 = vld [vmem:[#allocation11 + $0x20] sm:$0xff]  }
 0x3e6   : > { %v5236_v22 = vpop.eup %4166  ;;  %v1586_v24 = vmul.f32 1.442695, %v1531_v61  ;;  %v1588_v25 = vmul.f32 1.442695, %v1532_v62  ;;  %1634 = vadd.xlane.f32.xlu1 %v5233_v19 }
 0x3e7   : > { %1636 = vadd.xlane.f32.xlu0 %v5236_v22  ;;  %v1495_v28 = vpop.xlane.xlu1 %1494  ;;  %v1497_v38 = vpop.xlane.xlu0 %1496 }
 0x3e8   : > { %4180 = vpow2.f32 %v1586_v24  ;;  %v1533_v1 = vsub.f32 %v5132_v6, %v1495_v28  ;;  %v1534_v2 = vsub.f32 %v5129_v5, %v1497_v38  ;;  %3778 = vmatpush3.bf16.msra.mxu0 %v4111_v30 }
 0x3e9   : > { %v5242_v14 = vpop.eup %4168  ;;  %4182 = vpow2.f32 %v1588_v25  ;;  %3779 = vmatprep.subr.bf16.mxu0 %v4112_v10 }
 0x3ea   : > { %v5244_v31 = vpop.eup %4170  ;;  %v1590_v32 = vmul.f32 1.442695, %v1533_v1  ;;  %v1592_v46 = vmul.f32 1.442695, %v1534_v2  ;;  %1638 = vadd.xlane.f32.xlu1 %v5242_v14 }
 0x3eb   : > { %1640 = vadd.xlane.f32.xlu0 %v5244_v31  ;;  %v1499_v47 = vpop.xlane.xlu1 %1498  ;;  %v1501_v42 = vpop.xlane.xlu0 %1500 }
 0x3ec   : > { %4184 = vpow2.f32 %v1590_v32  ;;  %v1535_v45 = vsub.f32 %v5137_v8, %v1499_v47  ;;  %v1536_v6 = vsub.f32 %v5140_v9, %v1501_v42  ;;  %3780 = vmatpush3.bf16.msra.mxu0 %v4112_v10 }
 0x3ed   : > { %v5250_v5 = vpop.eup %4172  ;;  %4186 = vpow2.f32 %v1592_v46  ;;  %3781 = vmatprep.subr.bf16.mxu0 %v4113_v17 }
 0x3ee   : > { %v5252_v16 = vpop.eup %4174  ;;  %v1594_v48 = vmul.f32 1.442695, %v1535_v45  ;;  %v1596_v41 = vmul.f32 1.442695, %v1536_v6  ;;  %1642 = vadd.xlane.f32.xlu1 %v5250_v5 }
 0x3ef   : > { %1644 = vadd.xlane.f32.xlu0 %v5252_v16  ;;  %v1503_v50 = vpop.xlane.xlu1 %1502  ;;  %v1505_v51 = vpop.xlane.xlu0 %1504 }
 0x3f0   : > { %4188 = vpow2.f32 %v1594_v48  ;;  %v1537_v37 = vsub.f32 %v5148_v13, %v1503_v50  ;;  %v1538_v8 = vsub.f32 %v5145_v12, %v1505_v51  ;;  %3782 = vmatpush3.bf16.msra.mxu0 %v4113_v17 }
 0x3f1   : > { %v5258_v53 = vpop.eup %4176  ;;  %4190 = vpow2.f32 %v1596_v41  ;;  %3783 = vmatprep.subr.bf16.mxu0 %v4114_v39 }
 0x3f2   : > { %v5260_v9 = vpop.eup %4178  ;;  %v1598_v56 = vmul.f32 1.442695, %v1537_v37  ;;  %v1600_v20 = vmul.f32 1.442695, %v1538_v8  ;;  %1646 = vadd.xlane.f32.xlu1 %v5258_v53 }
 0x3f3   : > { %1648 = vadd.xlane.f32.xlu0 %v5260_v9  ;;  %v1507_v57 = vpop.xlane.xlu1 %1506 }
 0x3f4   : > { %4192 = vpow2.f32 %v1598_v56  ;;  %v1539_v54 = vsub.f32 %v5153_v15, %v1507_v57  ;;  %3784 = vmatpush3.bf16.msra.mxu0 %v4114_v39 }
 0x3f5   : > { %v5265_v55 = vpop.eup %4180  ;;  %4194 = vpow2.f32 %v1600_v20  ;;  %3785 = vmatprep.subr.bf16.mxu0 %v4115_v18 }
 0x3f6   : > { %v5267_v13 = vpop.eup %4182  ;;  %v1602_v12 = vmul.f32 1.442695, %v1539_v54  ;;  %1650 = vadd.xlane.f32.xlu1 %v5265_v55 }
 0x3f7   : > { %1652 = vadd.xlane.f32.xlu0 %v5267_v13 }
 0x3f8   : > { %4196 = vpow2.f32 %v1602_v12  ;;  %3786 = vmatpush3.bf16.msra.mxu0 %v4115_v18 }
 0x3f9   : > { %v5271_v23 = vpop.eup %4184 }
 0x3fa   : > { %v5273_v0 = vpop.eup %4186  ;;  %1654 = vadd.xlane.f32.xlu1 %v5271_v23 }
 0x3fb   : > { %1656 = vadd.xlane.f32.xlu0 %v5273_v0 }
 0x3fd   : > { %v5277_v15 = vpop.eup %4188 }
 0x3fe   : > { %v5279_v27 = vpop.eup %4190  ;;  %1658 = vadd.xlane.f32.xlu1 %v5277_v15 }
 0x3ff   : > { %1660 = vadd.xlane.f32.xlu0 %v5279_v27 }
 0x401   : > { %v5283_v26 = vpop.eup %4192 }
 0x402   : > { %v5285_v4 = vpop.eup %4194  ;;  %1662 = vadd.xlane.f32.xlu1 %v5283_v26 }
 0x403   : > { %1664 = vadd.xlane.f32.xlu0 %v5285_v4 }
 0x405   : > { %v5289_v35 = vpop.eup %4196 }
 0x406   : > { %1666 = vadd.xlane.f32.xlu1 %v5289_v35 }
 0x44f   : > { %v1605_v61 = vpop.xlane.xlu0 %1604 }
 0x450   : > { %4198 = vrcp.f32 %v1605_v61 }
 0x453   : > { %v1607_v62 = vpop.xlane.xlu1 %1606  ;;  %v1609_v21 = vpop.xlane.xlu0 %1608 }
 0x454   : > { %4200 = vrcp.f32 %v1607_v62 }
 0x455   : > { %4202 = vrcp.f32 %v1609_v21 }
 0x457   : > { %v1611_v24 = vpop.xlane.xlu1 %1610  ;;  %v1613_v25 = vpop.xlane.xlu0 %1612 }
 0x458   : > { %4204 = vrcp.f32 %v1611_v24 }
 0x459   : > { %4206 = vrcp.f32 %v1613_v25 }
 0x45b   : > { %v1615_v28 = vpop.xlane.xlu1 %1614 }
 0x45c   : > { %4208 = vrcp.f32 %v1615_v28  ;;  %v1617_v38 = vpop.xlane.xlu0 %1616 }
 0x45d   : > { %4210 = vrcp.f32 %v1617_v38  ;;  %v4199_v1 = vpop.eup %4198 }
 0x45e   : > { %v1700_v47 = vmul.f32 %v4199_v1, %v5167_v60 }
 0x45f   : > { %v1619_v2 = vpop.xlane.xlu1 %1618 }
 0x460   : > { %4212 = vrcp.f32 %v1619_v2  ;;  %v1621_v32 = vpop.xlane.xlu0 %1620 }
 0x461   : > { %v4201_v46 = vpop.eup %4200  ;;  %4214 = vrcp.f32 %v1621_v32 }
 0x462   : > { %v1701_v42 = vmul.f32 %v4201_v46, %v5174_v36  ;;  %v4203_v45 = vpop.eup %4202 }
 0x463   : > { %v1623_v6 = vpop.xlane.xlu1 %1622  ;;  %v1702_v51 = vmul.f32 %v4203_v45, %v5170_v3 }
 0x464   : > { %4216 = vrcp.f32 %v1623_v6  ;;  %v1625_v48 = vpop.xlane.xlu0 %1624  ;;  %v1732_v41 = vpack.c.bf16 %v1701_v42, %v1700_v47 }
 0x465   : > { %v4205_v50 = vpop.eup %4204  ;;  %4218 = vrcp.f32 %v1625_v48 }
 0x466   : > { %3743 = vmatprep.mubr.bf16.mxu1 %v1732_v41  ;;  %v1703_v37 = vmul.f32 %v4205_v50, %v5178_v11  ;;  %v4207_v8 = vpop.eup %4206 }
 0x467   : > { %v1627_v56 = vpop.xlane.xlu1 %1626  ;;  %v1704_v36 = vmul.f32 %v4207_v8, %v5182_v33 }
 0x468   : > { %4220 = vrcp.f32 %v1627_v56  ;;  %v1629_v20 = vpop.xlane.xlu0 %1628  ;;  %v1733_v57 = vpack.c.bf16 %v1703_v37, %v1702_v51 }
 0x469   : > { %v4209_v60 = vpop.eup %4208  ;;  %4222 = vrcp.f32 %v1629_v20 }
 0x46a   : > { %3744 = vmatmul.mubr.bf16.vlgmr.msra.gmra.mxu1 %v1733_v57  ;;  %v1705_v54 = vmul.f32 %v4209_v60, %v5189_v43  ;;  %v4211_v12 = vpop.eup %4210 }
 0x46b   : > { %v1631_v58 = vpop.xlane.xlu1 %1630  ;;  %v1706_v11 = vmul.f32 %v4211_v12, %v5191_v44 }
 0x46c   : > { %4224 = vrcp.f32 %v1631_v58  ;;  %v1633_v30 = vpop.xlane.xlu0 %1632  ;;  %v1734_v10 = vpack.c.bf16 %v1705_v54, %v1704_v36 }
 0x46d   : > { %v4213_v3 = vpop.eup %4212  ;;  %4226 = vrcp.f32 %v1633_v30 }
 0x46e   : > { %3747 = vmatprep.mubr.bf16.mxu1 %v1734_v10  ;;  %v1707_v17 = vmul.f32 %v4213_v3, %v5197_v40  ;;  %v4215_v39 = vpop.eup %4214 }
 0x46f   : > { %v1635_v18 = vpop.xlane.xlu1 %1634  ;;  %v1708_v43 = vmul.f32 %v4215_v39, %v5200_v34 }
 0x470   : > { %4228 = vrcp.f32 %v1635_v18  ;;  %v1637_v61 = vpop.xlane.xlu0 %1636  ;;  %v1735_v62 = vpack.c.bf16 %v1707_v17, %v1706_v11 }
 0x471   : > { %v4217_v33 = vpop.eup %4216  ;;  %4230 = vrcp.f32 %v1637_v61 }
 0x472   : > { %3748 = vmatmul.mubr.bf16.gmra.mxu1 %v1735_v62  ;;  %v1709_v21 = vmul.f32 %v4217_v33, %v5206_v49  ;;  %v4219_v24 = vpop.eup %4218 }
 0x473   : > { %v1639_v25 = vpop.xlane.xlu1 %1638  ;;  %v1710_v40 = vmul.f32 %v4219_v24, %v5209_v52 }
 0x474   : > { %4232 = vrcp.f32 %v1639_v25  ;;  %v1641_v28 = vpop.xlane.xlu0 %1640  ;;  %v1736_v38 = vpack.c.bf16 %v1709_v21, %v1708_v43 }
 0x475   : > { %v4221_v44 = vpop.eup %4220  ;;  %4234 = vrcp.f32 %v1641_v28 }
 0x476   : > { %3751 = vmatprep.mubr.bf16.mxu1 %v1736_v38  ;;  %v1711_v1 = vmul.f32 %v4221_v44, %v5215_v59  ;;  %v4223_v2 = vpop.eup %4222 }
 0x477   : > { %v1643_v32 = vpop.xlane.xlu1 %1642  ;;  %v1712_v49 = vmul.f32 %v4223_v2, %v5218_v63 }
 0x478   : > { %4236 = vrcp.f32 %v1643_v32  ;;  %v1645_v46 = vpop.xlane.xlu0 %1644  ;;  %v1737_v47 = vpack.c.bf16 %v1711_v1, %v1710_v40 }
 0x479   : > { %v4225_v34 = vpop.eup %4224  ;;  %4238 = vrcp.f32 %v1645_v46 }
 0x47a   : > { %3752 = vmatmul.mubr.bf16.gmra.mxu1 %v1737_v47  ;;  %v1713_v42 = vmul.f32 %v4225_v34, %v5224_v29  ;;  %v4227_v45 = vpop.eup %4226 }
 0x47b   : > { %v1647_v6 = vpop.xlane.xlu1 %1646  ;;  %v1714_v59 = vmul.f32 %v4227_v45, %v5227_v7  ;;  %v4120_v45 = vld [vmem:[#allocation14 + $0x30] sm:$0xff]  }
 0x47c   : > { %4240 = vrcp.f32 %v1647_v6  ;;  %v1649_v48 = vpop.xlane.xlu0 %1648  ;;  %v1738_v41 = vpack.c.bf16 %v1713_v42, %v1712_v49  ;;  %v4262_v49 = vld [vmem:[%s4861_s24] sm:$0xff]   ;;  %v4126_v6 = vld [vmem:[#allocation14 + $0x18] sm:$0xff]  }
 0x47d   : > { %v4229_v52 = vpop.eup %4228  ;;  %4242 = vrcp.f32 %v1649_v48  ;;  %v4117_v42 = vld [vmem:[#allocation11] sm:$0xff]   ;;  %v4128_v48 = vld [vmem:[#allocation14 + $0x10] sm:$0xff]  }
 0x47e   : > { %3755 = vmatprep.mubr.bf16.mxu1 %v1738_v41  ;;  %v1715_v50 = vmul.f32 %v4229_v52, %v5233_v19  ;;  %v4231_v51 = vpop.eup %4230  ;;  %v4130_v41 = vld [vmem:[#allocation14 + $0x8] sm:$0xff]  }
 0x47f   : > { %v1651_v37 = vpop.xlane.xlu1 %1650  ;;  %v1716_v29 = vmul.f32 %v4231_v51, %v5236_v22 }
 0x480   : > { %4244 = vrcp.f32 %v1651_v37  ;;  %v1653_v8 = vpop.xlane.xlu0 %1652  ;;  %v1739_v56 = vpack.c.bf16 %v1715_v50, %v1714_v59 }
 0x481   : > { %v4233_v63 = vpop.eup %4232  ;;  %4246 = vrcp.f32 %v1653_v8 }
 0x482   : > { %3756 = vmatmul.mubr.bf16.gmra.mxu1 %v1739_v56  ;;  %v1717_v20 = vmul.f32 %v4233_v63, %v5242_v14  ;;  %v4235_v57 = vpop.eup %4234  ;;  %v4121_v63 = vld [vmem:[#allocation13 + $0x30] sm:$0xff]  }
 0x483   : > { %v1655_v60 = vpop.xlane.xlu1 %1654  ;;  %v1718_v19 = vmul.f32 %v4235_v57, %v5244_v31  ;;  %v4123_v57 = vld [vmem:[#allocation13 + $0x28] sm:$0xff]  }
 0x484   : > { %4248 = vrcp.f32 %v1655_v60  ;;  %v1657_v36 = vpop.xlane.xlu0 %1656  ;;  %v1740_v54 = vpack.c.bf16 %v1717_v20, %v1716_v29 }
 0x485   : > { %v4237_v7 = vpop.eup %4236  ;;  %4250 = vrcp.f32 %v1657_v36 }
 0x486   : > { %3759 = vmatprep.mubr.bf16.mxu1 %v1740_v54  ;;  %v1719_v12 = vmul.f32 %v4237_v7, %v5250_v5  ;;  %v4239_v58 = vpop.eup %4238 }
 0x487   : > { %v1659_v30 = vpop.xlane.xlu1 %1658  ;;  %v1720_v14 = vmul.f32 %v4239_v58, %v5252_v16 }
 0x488   : > { %4252 = vrcp.f32 %v1659_v30  ;;  %v1661_v10 = vpop.xlane.xlu0 %1660  ;;  %v1741_v3 = vpack.c.bf16 %v1719_v12, %v1718_v19  ;;  %v4125_v19 = vld [vmem:[#allocation13 + $0x20] sm:$0xff]   ;;  %v4127_v30 = vld [vmem:[#allocation13 + $0x18] sm:$0xff]  }
 0x489   : > { %v4241_v22 = vpop.eup %4240  ;;  %4254 = vrcp.f32 %v1661_v10 }
 0x48a   : > { %3760 = vmatmul.mubr.bf16.gmra.mxu1 %v1741_v3  ;;  %v1721_v11 = vmul.f32 %v4241_v22, %v5258_v53  ;;  %v4243_v17 = vpop.eup %4242 }
 0x48b   : > { %v1663_v39 = vpop.xlane.xlu1 %1662  ;;  %v1722_v5 = vmul.f32 %v4243_v17, %v5260_v9 }
 0x48c   : > { %4256 = vrcp.f32 %v1663_v39  ;;  %v1665_v18 = vpop.xlane.xlu0 %1664  ;;  %v1742_v61 = vpack.c.bf16 %v1721_v11, %v1720_v14  ;;  %v4129_v11 = vld [vmem:[#allocation13 + $0x10] sm:$0xff]  }
 0x48d   : > { %v4245_v31 = vpop.eup %4244  ;;  %4258 = vrcp.f32 %v1665_v18  ;;  %v4131_v18 = vld [vmem:[#allocation13 + $0x8] sm:$0xff]  }
 0x48e   : > { %3763 = vmatprep.mubr.bf16.mxu1 %v1742_v61  ;;  %v1723_v62 = vmul.f32 %v4245_v31, %v5265_v55  ;;  %v4247_v33 = vpop.eup %4246 }
 0x48f   : > { %v1667_v43 = vpop.xlane.xlu1 %1666  ;;  %v1724_v16 = vmul.f32 %v4247_v33, %v5267_v13 }
 0x490   : > { %4260 = vrcp.f32 %v1667_v43  ;;  %v1743_v21 = vpack.c.bf16 %v1723_v62, %v1722_v5 }
 0x491   : > { %v4249_v24 = vpop.eup %4248 }
 0x492   : > { %3764 = vmatmul.mubr.bf16.gmra.mxu1 %v1743_v21  ;;  %v1725_v53 = vmul.f32 %v4249_v24, %v5271_v23  ;;  %v4251_v25 = vpop.eup %4250 }
 0x493   : > { %v1726_v44 = vmul.f32 %v4251_v25, %v5273_v0 }
 0x494   : > { %v1744_v28 = vpack.c.bf16 %v1725_v53, %v1724_v16 }
 0x495   : > { %v4253_v38 = vpop.eup %4252 }
 0x496   : > { %3767 = vmatprep.mubr.bf16.mxu1 %v1744_v28  ;;  %v1727_v9 = vmul.f32 %v4253_v38, %v5277_v15  ;;  %v4255_v55 = vpop.eup %4254  ;;  %v4116_v15 = vld [vmem:[#allocation11 + $0x8] sm:$0xff]  }
 0x497   : > { %v1728_v2 = vmul.f32 %v4255_v55, %v5279_v27  ;;  %3787 = vmatprep.subr.bf16.mxu0 %v4116_v15  ;;  %v4118_v27 = vld [vmem:[#allocation14 + $0x38] sm:$0xff]  }
 0x498   : > { %v1745_v40 = vpack.c.bf16 %v1727_v9, %v1726_v44  ;;  %3788 = vmatpush3.bf16.msra.mxu0 %v4116_v15  ;;  %3823 = vmatprep.subr.bf16.mxu1 %v4118_v27  ;;  %v4132_v15 = vld [vmem:[#allocation14] sm:$0xff]  }
 0x499   : > { %v4257_v1 = vpop.eup %4256  ;;  %3789 = vmatprep.subr.bf16.mxu0 %v4117_v42  ;;  %3824 = vmatpush3.bf16.msra.mxu1 %v4118_v27  ;;  %v4263_v27 = vld [vmem:[%s4861_s24 + $0x8] sm:$0xff]  }
 0x49a   : > { %3768 = vmatmul.mubr.bf16.gmra.mxu1 %v1745_v40  ;;  %v1729_v32 = vmul.f32 %v4257_v1, %v5283_v26  ;;  %v4259_v13 = vpop.eup %4258  ;;  %v4119_v26 = vld [vmem:[#allocation13 + $0x38] sm:$0xff]   ;;  %3825 = vmatprep.subr.bf16.mxu1 %v4120_v45 }
 0x49b   : > { %v1730_v47 = vmul.f32 %v4259_v13, %v5285_v4  ;;  %v4122_v4 = vld [vmem:[#allocation14 + $0x28] sm:$0xff]  }
 0x49c   : > { %v1746_v46 = vpack.c.bf16 %v1729_v32, %v1728_v2  ;;  %3790 = vmatpush3.bf16.msra.mxu0 %v4117_v42  ;;  %v4133_v42 = vld [vmem:[#allocation13] sm:$0xff]  }
 0x49d   : > { %v4261_v23 = vpop.eup %4260  ;;  %3871 = vmatprep.subr.bf16.mxu0 %v4119_v26  ;;  %3826 = vmatpush3.bf16.msra.mxu1 %v4120_v45  ;;  %v4265_v45 = vld [vmem:[%s4861_s24 + $0x18] sm:$0xff]  }
 0x49e   : > { %3771 = vmatprep.mubr.bf16.mxu1 %v1746_v46  ;;  %v1731_v34 = vmul.f32 %v4261_v23, %v5289_v35  ;;  %3827 = vmatprep.subr.bf16.mxu1 %v4122_v4  ;;  %v4124_v35 = vld [vmem:[#allocation14 + $0x20] sm:$0xff]  }
 0x4a0   : > { %v1747_v0 = vpack.c.bf16 %v1731_v34, %v1730_v47 }
 0x4a1   : > { %3828 = vmatpush3.bf16.msra.mxu1 %v4122_v4  ;;  %v4266_v4 = vld [vmem:[%s4861_s24 + $0x20] sm:$0xff]  }
 0x4a2   : > { %3772 = vmatmul.mubr.bf16.gmra.mxu1 %v1747_v0  ;;  %3829 = vmatprep.subr.bf16.mxu1 %v4124_v35 }
 0x4a3   : > { %3839 = vmatprep.mubr.bf16.mxu1 %v4262_v49 }
 0x4a5   : > { %3830 = vmatpush3.bf16.msra.mxu1 %v4124_v35  ;;  %v4267_v35 = vld [vmem:[%s4861_s24 + $0x28] sm:$0xff]  }
 0x4a6   : > { %3831 = vmatprep.subr.bf16.mxu1 %v4126_v6 }
 0x4a9   : > { %3832 = vmatpush3.bf16.msra.mxu1 %v4126_v6  ;;  %v4268_v6 = vld [vmem:[%s4861_s24 + $0x30] sm:$0xff]  }
 0x4aa   : > { %3833 = vmatprep.subr.bf16.mxu1 %v4128_v48 }
 0x4ad   : > { %3834 = vmatpush3.bf16.msra.mxu1 %v4128_v48  ;;  %v4269_v48 = vld [vmem:[%s4861_s24 + $0x38] sm:$0xff]  }
 0x4ae   : > { %3835 = vmatprep.subr.bf16.mxu1 %v4130_v41 }
 0x4b1   : > { %3836 = vmatpush3.bf16.msra.mxu1 %v4130_v41  ;;  %v4270_v41 = vld [vmem:[%s4861_s24 + $0x40] sm:$0xff]  }
 0x4b2   : > { %3837 = vmatprep.subr.bf16.mxu1 %v4132_v15 }
 0x4b5   : > { %3838 = vmatpush3.bf16.msra.mxu1 %v4132_v15 }
 0x4b8   : > { %3840 = vmatmul.mubr.bf16.vlgmr.msra.gmra.mxu1 %v4263_v27 }
 0x52a   : > { %v3745_v52 = vpop.f32.mrf.mxu1 }
 0x52c   : > { %v1846_v59 = vpop.f32.mrf.mxu1 }
 0x52e   : > { %v3746_v50 = vpop.f32.mrf.mxu1 }
 0x52f   : > { %v1974_v8 = vpack.c.bf16 %v3746_v50, %v3745_v52  ;;  %v4271_v52 = vld [vmem:[%s4861_s24 + $0x48] sm:$0xff]   ;;  %v4273_v50 = vld [vmem:[%s4861_s24 + $0x58] sm:$0xff]  }
 0x530   : > { %v1849_v51 = vpop.f32.mrf.mxu1 }
 0x531   : > { %v1973_v37 = vpack.c.bf16 %v1849_v51, %v1846_v59  ;;  %v4272_v59 = vld [vmem:[%s4861_s24 + $0x50] sm:$0xff]   ;;  %v4274_v51 = vld [vmem:[%s4861_s24 + $0x60] sm:$0xff]  }
 0x532   : > { %v3749_v56 = vpop.f32.mrf.mxu1 }
 0x533   : > { %3791 = vmatprep.mubr.bf16.mxu0 %v1973_v37  ;;  %v4275_v37 = vld [vmem:[%s4861_s24 + $0x68] sm:$0xff]  }
 0x534   : > { %v1862_v29 = vpop.f32.mrf.mxu1  ;;  %3792 = vmatmul.mubr.bf16.vlgmr.msra.gmra.mxu0 %v1974_v8  ;;  %v4276_v8 = vld [vmem:[%s4861_s24 + $0x70] sm:$0xff]  }
 0x535   : > { %3872 = vmatpush3.bf16.msra.mxu0 %v4119_v26  ;;  %v4264_v26 = vld [vmem:[%s4861_s24 + $0x10] sm:$0xff]  }
 0x536   : > { %v3750_v20 = vpop.f32.mrf.mxu1  ;;  %3873 = vmatprep.subr.bf16.mxu0 %v4121_v63  ;;  %3843 = vmatprep.mubr.bf16.mxu1 %v4264_v26 }
 0x537   : > { %v1976_v54 = vpack.c.bf16 %v3750_v20, %v3749_v56  ;;  %3844 = vmatmul.mubr.bf16.gmra.mxu1 %v4265_v45  ;;  %v4277_v56 = vld [vmem:[%s4861_s24 + $0x78] sm:$0xff]   ;;  %v5343_v20 = vld [vmem:[%s5581_s20 + $0x2] ss:$0 sm:$0xff] }
 0x538   : > { %v1865_v60 = vpop.f32.mrf.mxu1  ;;  %3847 = vmatprep.mubr.bf16.mxu1 %v4266_v4 }
 0x539   : > { %v1975_v36 = vpack.c.bf16 %v1865_v60, %v1862_v29  ;;  %3874 = vmatpush3.bf16.msra.mxu0 %v4121_v63 }
 0x53a   : > { %v3753_v7 = vpop.f32.mrf.mxu1  ;;  %3875 = vmatprep.subr.bf16.mxu0 %v4123_v57 }
 0x53b   : > { %3795 = vmatprep.mubr.bf16.mxu0 %v1975_v36 }
 0x53c   : > { %v1878_v12 = vpop.f32.mrf.mxu1  ;;  %3796 = vmatmul.mubr.bf16.gmra.mxu0 %v1976_v54 }
 0x53d   : > { %3876 = vmatpush3.bf16.msra.mxu0 %v4123_v57 }
 0x53e   : > { %v3754_v58 = vpop.f32.mrf.mxu1  ;;  %3877 = vmatprep.subr.bf16.mxu0 %v4125_v19 }
 0x53f   : > { %v1978_v22 = vpack.c.bf16 %v3754_v58, %v3753_v7  ;;  %3848 = vmatmul.mubr.bf16.gmra.mxu1 %v4267_v35 }
 0x540   : > { %v1881_v10 = vpop.f32.mrf.mxu1  ;;  %3851 = vmatprep.mubr.bf16.mxu1 %v4268_v6 }
 0x541   : > { %v1977_v3 = vpack.c.bf16 %v1881_v10, %v1878_v12  ;;  %3878 = vmatpush3.bf16.msra.mxu0 %v4125_v19 }
 0x542   : > { %v3757_v14 = vpop.f32.mrf.mxu1  ;;  %3879 = vmatprep.subr.bf16.mxu0 %v4127_v30 }
 0x543   : > { %3799 = vmatprep.mubr.bf16.mxu0 %v1977_v3 }
 0x544   : > { %v1894_v17 = vpop.f32.mrf.mxu1  ;;  %3800 = vmatmul.mubr.bf16.gmra.mxu0 %v1978_v22 }
 0x545   : > { %3880 = vmatpush3.bf16.msra.mxu0 %v4127_v30 }
 0x546   : > { %v3758_v39 = vpop.f32.mrf.mxu1  ;;  %3881 = vmatprep.subr.bf16.mxu0 %v4129_v11 }
 0x547   : > { %v1980_v5 = vpack.c.bf16 %v3758_v39, %v3757_v14  ;;  %3852 = vmatmul.mubr.bf16.gmra.mxu1 %v4269_v48 }
 0x548   : > { %v1897_v61 = vpop.f32.mrf.mxu1  ;;  %3855 = vmatprep.mubr.bf16.mxu1 %v4270_v41 }
 0x549   : > { %v1979_v31 = vpack.c.bf16 %v1897_v61, %v1894_v17  ;;  %3882 = vmatpush3.bf16.msra.mxu0 %v4129_v11 }
 0x54a   : > { %v3761_v62 = vpop.f32.mrf.mxu1  ;;  %3883 = vmatprep.subr.bf16.mxu0 %v4131_v18 }
 0x54b   : > { %3803 = vmatprep.mubr.bf16.mxu0 %v1979_v31 }
 0x54c   : > { %v1910_v33 = vpop.f32.mrf.mxu1  ;;  %3804 = vmatmul.mubr.bf16.gmra.mxu0 %v1980_v5 }
 0x54d   : > { %3884 = vmatpush3.bf16.msra.mxu0 %v4131_v18 }
 0x54e   : > { %v3762_v43 = vpop.f32.mrf.mxu1  ;;  %3885 = vmatprep.subr.bf16.mxu0 %v4133_v42 }
 0x54f   : > { %v1982_v16 = vpack.c.bf16 %v3762_v43, %v3761_v62  ;;  %3856 = vmatmul.mubr.bf16.gmra.mxu1 %v4271_v52 }
 0x550   : > { %v1913_v21 = vpop.f32.mrf.mxu1  ;;  %3859 = vmatprep.mubr.bf16.mxu1 %v4272_v59 }
 0x551   : > { %v1981_v24 = vpack.c.bf16 %v1913_v21, %v1910_v33  ;;  %3886 = vmatpush3.bf16.msra.mxu0 %v4133_v42 }
 0x552   : > { %v3765_v53 = vpop.f32.mrf.mxu1 }
 0x553   : > { %3807 = vmatprep.mubr.bf16.mxu0 %v1981_v24 }
 0x554   : > { %v1926_v25 = vpop.f32.mrf.mxu1  ;;  %3808 = vmatmul.mubr.bf16.gmra.mxu0 %v1982_v16 }
 0x556   : > { %v3766_v28 = vpop.f32.mrf.mxu1 }
 0x557   : > { %v1984_v9 = vpack.c.bf16 %v3766_v28, %v3765_v53  ;;  %3860 = vmatmul.mubr.bf16.gmra.mxu1 %v4273_v50 }
 0x558   : > { %v1929_v38 = vpop.f32.mrf.mxu1  ;;  %3863 = vmatprep.mubr.bf16.mxu1 %v4274_v51 }
 0x559   : > { %v1983_v44 = vpack.c.bf16 %v1929_v38, %v1926_v25 }
 0x55a   : > { %v3769_v55 = vpop.f32.mrf.mxu1 }
 0x55b   : > { %3811 = vmatprep.mubr.bf16.mxu0 %v1983_v44 }
 0x55c   : > { %v1942_v40 = vpop.f32.mrf.mxu1  ;;  %3812 = vmatmul.mubr.bf16.gmra.mxu0 %v1984_v9 }
 0x55e   : > { %v3770_v1 = vpop.f32.mrf.mxu1 }
 0x55f   : > { %v1986_v13 = vpack.c.bf16 %v3770_v1, %v3769_v55  ;;  %3864 = vmatmul.mubr.bf16.gmra.mxu1 %v4275_v37 }
 0x560   : > { %v1945_v2 = vpop.f32.mrf.mxu1  ;;  %3867 = vmatprep.mubr.bf16.mxu1 %v4276_v8 }
 0x561   : > { %v1985_v32 = vpack.c.bf16 %v1945_v2, %v1942_v40 }
 0x562   : > { %v3773_v46 = vpop.f32.mrf.mxu1 }
 0x563   : > { %3815 = vmatprep.mubr.bf16.mxu0 %v1985_v32 }
 0x564   : > { %v1958_v23 = vpop.f32.mrf.mxu1  ;;  %3816 = vmatmul.mubr.bf16.gmra.mxu0 %v1986_v13 }
 0x566   : > { %v3774_v47 = vpop.f32.mrf.mxu1 }
 0x567   : > { %v1988_v49 = vpack.c.bf16 %v3774_v47, %v3773_v46  ;;  %3868 = vmatmul.mubr.bf16.gmra.mxu1 %v4277_v56 }
 0x568   : > { %v1961_v34 = vpop.f32.mrf.mxu1 }
 0x569   : > { %v1987_v0 = vpack.c.bf16 %v1961_v34, %v1958_v23 }
 0x56b   : > { %3819 = vmatprep.mubr.bf16.mxu0 %v1987_v0 }
 0x56c   : > { %3820 = vmatmul.mubr.bf16.gmra.mxu0 %v1988_v49 }
 0x5f4   : > { %v3793_v63 = vpop.f32.mrf.mxu0 }
 0x5f5   : > { %v2102_v54 = vadd.f32 %v3793_v63, %v5343_v20 }
 0x5f6   : > { %v2093_v29 = vpop.f32.mrf.mxu0 }
 0x5f7   : > { %v2094_v60 = vadd.f32 %v5343_v20, %v2093_v29  ;;  %v2222_v3 = vmax.f32 %v2102_v54, 0.0 }
 0x5f8   : > { %v3794_v57 = vpop.f32.mrf.mxu0 }
 0x5f9   : > { %v2105_v36 = vadd.f32 %v3794_v57, %v5343_v20  ;;  %v2220_v30 = vmax.f32 %v2094_v60, 0.0 }
 0x5fa   : > { %v2096_v7 = vpop.f32.mrf.mxu0 }
 0x5fb   : > { %v2097_v19 = vadd.f32 %v5343_v20, %v2096_v7  ;;  %v2223_v12 = vmax.f32 %v2105_v36, 0.0 }
 0x5fc   : > { %v3797_v58 = vpop.f32.mrf.mxu0 }
 0x5fd   : > { %v2221_v10 = vmax.f32 %v2097_v19, 0.0  ;;  %v2253_v11 = vpack.c.bf16 %v2223_v12, %v2222_v3  ;;  %v2118_v61 = vadd.f32 %v3797_v58, %v5343_v20 }
 0x5fe   : > { %v2109_v22 = vpop.f32.mrf.mxu0 }
 0x5ff   : > { %v2252_v14 = vpack.c.bf16 %v2221_v10, %v2220_v30  ;;  %v2110_v39 = vadd.f32 %v5343_v20, %v2109_v22  ;;  %v2226_v24 = vmax.f32 %v2118_v61, 0.0 }
 0x600   : > { %v3798_v17 = vpop.f32.mrf.mxu0 }
 0x601   : > { %v2121_v18 = vadd.f32 %v3798_v17, %v5343_v20  ;;  %3887 = vmatprep.mubr.bf16.mxu0 %v2252_v14  ;;  %v2224_v43 = vmax.f32 %v2110_v39, 0.0 }
 0x602   : > { %v2112_v31 = vpop.f32.mrf.mxu0  ;;  %3888 = vmatmul.mubr.bf16.vlgmr.msra.gmra.mxu0 %v2253_v11 }
 0x603   : > { %v2113_v5 = vadd.f32 %v5343_v20, %v2112_v31  ;;  %v2227_v62 = vmax.f32 %v2121_v18, 0.0 }
 0x604   : > { %v3801_v33 = vpop.f32.mrf.mxu0 }
 0x605   : > { %v2225_v21 = vmax.f32 %v2113_v5, 0.0  ;;  %v2255_v25 = vpack.c.bf16 %v2227_v62, %v2226_v24  ;;  %v2134_v9 = vadd.f32 %v3801_v33, %v5343_v20 }
 0x606   : > { %v2125_v16 = vpop.f32.mrf.mxu0 }
 0x607   : > { %v2254_v53 = vpack.c.bf16 %v2225_v21, %v2224_v43  ;;  %v2126_v38 = vadd.f32 %v5343_v20, %v2125_v16  ;;  %v2230_v46 = vmax.f32 %v2134_v9, 0.0 }
 0x608   : > { %v3802_v28 = vpop.f32.mrf.mxu0 }
 0x609   : > { %v2137_v44 = vadd.f32 %v3802_v28, %v5343_v20  ;;  %3891 = vmatprep.mubr.bf16.mxu0 %v2254_v53  ;;  %v2228_v32 = vmax.f32 %v2126_v38, 0.0 }
 0x60a   : > { %v2128_v55 = vpop.f32.mrf.mxu0  ;;  %3892 = vmatmul.mubr.bf16.gmra.mxu0 %v2255_v25 }
 0x60b   : > { %v2129_v40 = vadd.f32 %v5343_v20, %v2128_v55  ;;  %v2231_v1 = vmax.f32 %v2137_v44, 0.0 }
 0x60c   : > { %v3805_v2 = vpop.f32.mrf.mxu0 }
 0x60d   : > { %v2229_v13 = vmax.f32 %v2129_v40, 0.0  ;;  %v2257_v34 = vpack.c.bf16 %v2231_v1, %v2230_v46  ;;  %v2150_v42 = vadd.f32 %v3805_v2, %v5343_v20 }
 0x60e   : > { %v2141_v23 = vpop.f32.mrf.mxu0 }
 0x60f   : > { %v2256_v47 = vpack.c.bf16 %v2229_v13, %v2228_v32  ;;  %v2142_v49 = vadd.f32 %v5343_v20, %v2141_v23  ;;  %v2234_v48 = vmax.f32 %v2150_v42, 0.0 }
 0x610   : > { %v3806_v0 = vpop.f32.mrf.mxu0 }
 0x611   : > { %v2153_v15 = vadd.f32 %v3806_v0, %v5343_v20  ;;  %3895 = vmatprep.mubr.bf16.mxu0 %v2256_v47  ;;  %v2232_v35 = vmax.f32 %v2142_v49, 0.0 }
 0x612   : > { %v2144_v27 = vpop.f32.mrf.mxu0  ;;  %3896 = vmatmul.mubr.bf16.gmra.mxu0 %v2257_v34 }
 0x613   : > { %v2145_v26 = vadd.f32 %v5343_v20, %v2144_v27  ;;  %v2235_v45 = vmax.f32 %v2153_v15, 0.0 }
 0x614   : > { %v3809_v4 = vpop.f32.mrf.mxu0 }
 0x615   : > { %v2233_v6 = vmax.f32 %v2145_v26, 0.0  ;;  %v2259_v59 = vpack.c.bf16 %v2235_v45, %v2234_v48  ;;  %v2166_v8 = vadd.f32 %v3809_v4, %v5343_v20  ;;  %v3841_v26 = vpop.f32.mrf.mxu1 }
 0x616   : > { %v2157_v41 = vpop.f32.mrf.mxu0 }
 0x617   : > { %v2258_v52 = vpack.c.bf16 %v2233_v6, %v2232_v35  ;;  %v2158_v51 = vadd.f32 %v5343_v20, %v2157_v41  ;;  %v2238_v54 = vmax.f32 %v2166_v8, 0.0  ;;  %v2382_v45 = vpop.f32.mrf.mxu1 }
 0x618   : > { %v3810_v50 = vpop.f32.mrf.mxu0 }
 0x619   : > { %v2169_v37 = vadd.f32 %v3810_v50, %v5343_v20  ;;  %3899 = vmatprep.mubr.bf16.mxu0 %v2258_v52  ;;  %v2236_v60 = vmax.f32 %v2158_v51, 0.0  ;;  %v3842_v4 = vpop.f32.mrf.mxu1 }
 0x61a   : > { %v2160_v56 = vpop.f32.mrf.mxu0  ;;  %3900 = vmatmul.mubr.bf16.gmra.mxu0 %v2259_v59 }
 0x61b   : > { %v2161_v63 = vadd.f32 %v5343_v20, %v2160_v56  ;;  %v2239_v29 = vmax.f32 %v2169_v37, 0.0  ;;  %v2385_v35 = vpop.f32.mrf.mxu1 }
 0x61c   : > { %v3813_v57 = vpop.f32.mrf.mxu0 }
 0x61d   : > { %v2237_v36 = vmax.f32 %v2161_v63, 0.0  ;;  %v2261_v12 = vpack.c.bf16 %v2239_v29, %v2238_v54  ;;  %v2182_v3 = vadd.f32 %v3813_v57, %v5343_v20  ;;  %v3845_v6 = vpop.f32.mrf.mxu1 }
 0x61e   : > { %v2173_v7 = vpop.f32.mrf.mxu0 }
 0x61f   : > { %v2260_v19 = vpack.c.bf16 %v2237_v36, %v2236_v60  ;;  %v2174_v30 = vadd.f32 %v5343_v20, %v2173_v7  ;;  %v2242_v61 = vmax.f32 %v2182_v3, 0.0  ;;  %v2398_v48 = vpop.f32.mrf.mxu1  ;;  %v5390_v60 = vld [vmem:[%s5581_s20 + $0x3] ss:$0 sm:$0xff] }
 0x620   : > { %v3814_v58 = vpop.f32.mrf.mxu0 }
 0x621   : > { %v2185_v10 = vadd.f32 %v3814_v58, %v5343_v20  ;;  %3903 = vmatprep.mubr.bf16.mxu0 %v2260_v19  ;;  %v2240_v39 = vmax.f32 %v2174_v30, 0.0  ;;  %v3846_v41 = vpop.f32.mrf.mxu1 }
 0x622   : > { %v2176_v22 = vpop.f32.mrf.mxu0  ;;  %3904 = vmatmul.mubr.bf16.gmra.mxu0 %v2261_v12 }
 0x623   : > { %v2177_v14 = vadd.f32 %v5343_v20, %v2176_v22  ;;  %v2243_v11 = vmax.f32 %v2185_v10, 0.0  ;;  %v2401_v52 = vpop.f32.mrf.mxu1 }
 0x624   : > { %v3817_v17 = vpop.f32.mrf.mxu0 }
 0x625   : > { %v2241_v18 = vmax.f32 %v2177_v14, 0.0  ;;  %v2263_v62 = vpack.c.bf16 %v2243_v11, %v2242_v61  ;;  %v2198_v24 = vadd.f32 %v3817_v17, %v5343_v20  ;;  %v3849_v59 = vpop.f32.mrf.mxu1 }
 0x626   : > { %v2189_v31 = vpop.f32.mrf.mxu0 }
 0x627   : > { %v2262_v5 = vpack.c.bf16 %v2241_v18, %v2240_v39  ;;  %v2190_v43 = vadd.f32 %v5343_v20, %v2189_v31  ;;  %v2246_v9 = vmax.f32 %v2198_v24, 0.0  ;;  %v2414_v50 = vpop.f32.mrf.mxu1 }
 0x628   : > { %v3818_v33 = vpop.f32.mrf.mxu0 }
 0x629   : > { %v2201_v21 = vadd.f32 %v3818_v33, %v5343_v20  ;;  %3907 = vmatprep.mubr.bf16.mxu0 %v2262_v5  ;;  %v2244_v38 = vmax.f32 %v2190_v43, 0.0  ;;  %v3850_v51 = vpop.f32.mrf.mxu1 }
 0x62a   : > { %v2192_v16 = vpop.f32.mrf.mxu0  ;;  %3908 = vmatmul.mubr.bf16.gmra.mxu0 %v2263_v62 }
 0x62b   : > { %v2193_v53 = vadd.f32 %v5343_v20, %v2192_v16  ;;  %v2247_v25 = vmax.f32 %v2201_v21, 0.0 }
 0x62c   : > { %v3821_v28 = vpop.f32.mrf.mxu0 }
 0x62d   : > { %v2245_v44 = vmax.f32 %v2193_v53, 0.0  ;;  %v2265_v1 = vpack.c.bf16 %v2247_v25, %v2246_v9  ;;  %v2214_v46 = vadd.f32 %v3821_v28, %v5343_v20 }
 0x62e   : > { %v2205_v55 = vpop.f32.mrf.mxu0 }
 0x62f   : > { %v2264_v40 = vpack.c.bf16 %v2245_v44, %v2244_v38  ;;  %v2206_v32 = vadd.f32 %v5343_v20, %v2205_v55  ;;  %v2250_v15 = vmax.f32 %v2214_v46, 0.0 }
 0x630   : > { %v3822_v2 = vpop.f32.mrf.mxu0 }
 0x631   : > { %v2217_v13 = vadd.f32 %v3822_v2, %v5343_v20  ;;  %3911 = vmatprep.mubr.bf16.mxu0 %v2264_v40  ;;  %v2248_v0 = vmax.f32 %v2206_v32, 0.0 }
 0x632   : > { %v2208_v23 = vpop.f32.mrf.mxu0  ;;  %3912 = vmatmul.mubr.bf16.gmra.mxu0 %v2265_v1 }
 0x633   : > { %v2209_v47 = vadd.f32 %v5343_v20, %v2208_v23  ;;  %v2251_v34 = vmax.f32 %v2217_v13, 0.0  ;;  %v5377_v20 = vpop.f32.mrf.mxu1 }
 0x635   : > { %v2249_v49 = vmax.f32 %v2209_v47, 0.0  ;;  %v2267_v27 = vpack.c.bf16 %v2251_v34, %v2250_v15  ;;  %v5379_v37 = vpop.f32.mrf.mxu1 }
 0x637   : > { %v2266_v42 = vpack.c.bf16 %v2249_v49, %v2248_v0  ;;  %v5381_v8 = vpop.f32.mrf.mxu1 }
 0x639   : > { %3915 = vmatprep.mubr.bf16.mxu0 %v2266_v42  ;;  %v5383_v56 = vpop.f32.mrf.mxu1 }
 0x63a   : > { %3916 = vmatmul.mubr.bf16.gmra.mxu0 %v2267_v27 }
 0x63b   : > { %v5385_v63 = vpop.f32.mrf.mxu1 }
 0x63d   : > { %v5392_v54 = vpop.f32.mrf.mxu1 }
 0x63f   : > { %v5395_v10 = vpop.f32.mrf.mxu1 }
 0x641   : > { %v5400_v5 = vpop.f32.mrf.mxu1 }
 0x643   : > { %v5408_v38 = vpop.f32.mrf.mxu1 }
 0x645   : > { %v5414_v23 = vpop.f32.mrf.mxu1 }
 0x6c2   : > { %v3889_v29 = vpop.f32.mrf.mxu0 }
 0x6c3   : > { %v2600_v57 = vadd.f32 %v3889_v29, %v3841_v26 }
 0x6c4   : > { %v2591_v36 = vpop.f32.mrf.mxu0 }
 0x6c5   : > { %v2592_v7 = vadd.f32 %v2591_v36, %v2382_v45  ;;  %v2726_v12 = vadd.f32 %v5390_v60, %v2600_v57 }
 0x6c6   : > { %v3890_v19 = vpop.f32.mrf.mxu0 }
 0x6c7   : > { %v2603_v58 = vadd.f32 %v3890_v19, %v3842_v4  ;;  %v2724_v3 = vadd.f32 %v5390_v60, %v2592_v7  ;;  %v2758_v17 = vmax.f32 %v2726_v12, 0.0  ;;  %v2462_v4 = vpop.f32.mrf.mxu1 }
 0x6c8   : > { %v2594_v30 = vpop.f32.mrf.mxu0 }
 0x6c9   : > { %v2727_v22 = vadd.f32 %v5390_v60, %v2603_v58  ;;  %v2595_v14 = vadd.f32 %v2594_v30, %v2385_v35  ;;  %v2756_v62 = vmax.f32 %v2724_v3, 0.0 }
 0x6ca   : > { %v3893_v11 = vpop.f32.mrf.mxu0 }
 0x6cb   : > { %v2759_v39 = vmax.f32 %v2727_v22, 0.0  ;;  %v2725_v18 = vadd.f32 %v5390_v60, %v2595_v14  ;;  %v2616_v61 = vadd.f32 %v3893_v11, %v3845_v6 }
 0x6cc   : > { %v2607_v31 = vpop.f32.mrf.mxu0 }
 0x6cd   : > { %v3328_v33 = vpack.c.bf16 %v2759_v39, %v2758_v17  ;;  %v2757_v43 = vmax.f32 %v2725_v18, 0.0  ;;  %v2608_v21 = vadd.f32 %v2607_v31, %v2398_v48  ;;  %v2730_v53 = vadd.f32 %v5390_v60, %v2616_v61 }
 0x6ce   : > { %v3894_v24 = vpop.f32.mrf.mxu0 }
 0x6cf   : > { %3400 = vst [vmem:[%s5404_s18 + $0x8] sm:$0xff] %v3328_v33   ;;  %v3323_v16 = vpack.c.bf16 %v2757_v43, %v2756_v62  ;;  %v2619_v25 = vadd.f32 %v3894_v24, %v3846_v41  ;;  %v2728_v44 = vadd.f32 %v5390_v60, %v2608_v21  ;;  %v2762_v1 = vmax.f32 %v2730_v53, 0.0 }
 0x6d0   : > { %v2610_v28 = vpop.f32.mrf.mxu0 }
 0x6d1   : > { %3324 = vst [vmem:[%s5404_s18] sm:$0xff] %v3323_v16   ;;  %v2731_v9 = vadd.f32 %v5390_v60, %v2619_v25  ;;  %v2611_v55 = vadd.f32 %v2610_v28, %v2401_v52  ;;  %v2760_v47 = vmax.f32 %v2728_v44, 0.0 }
 0x6d2   : > { %v3897_v40 = vpop.f32.mrf.mxu0 }
 0x6d3   : > { %v2763_v2 = vmax.f32 %v2731_v9, 0.0  ;;  %v2729_v32 = vadd.f32 %v5390_v60, %v2611_v55  ;;  %v2632_v13 = vadd.f32 %v3897_v40, %v3849_v59 }
 0x6d4   : > { %v2623_v46 = vpop.f32.mrf.mxu0 }
 0x6d5   : > { %v3338_v34 = vpack.c.bf16 %v2763_v2, %v2762_v1  ;;  %v2761_v0 = vmax.f32 %v2729_v32, 0.0  ;;  %v2624_v49 = vadd.f32 %v2623_v46, %v2414_v50  ;;  %v2734_v27 = vadd.f32 %v5390_v60, %v2632_v13 }
 0x6d6   : > { %v3898_v15 = vpop.f32.mrf.mxu0 }
 0x6d7   : > { %3402 = vst [vmem:[%s5404_s18 + $0x18] sm:$0xff] %v3338_v34   ;;  %v3333_v42 = vpack.c.bf16 %v2761_v0, %v2760_v47  ;;  %v2635_v26 = vadd.f32 %v3898_v15, %v3850_v51  ;;  %v2732_v35 = vadd.f32 %v5390_v60, %v2624_v49  ;;  %v2766_v52 = vmax.f32 %v2734_v27, 0.0  ;;  %v3862_v51 = vpop.f32.mrf.mxu1 }
 0x6d8   : > { %v2626_v45 = vpop.f32.mrf.mxu0 }
 0x6d9   : > { %3401 = vst [vmem:[%s5404_s18 + $0x10] sm:$0xff] %v3333_v42   ;;  %v2735_v6 = vadd.f32 %v5390_v60, %v2635_v26  ;;  %v2627_v48 = vadd.f32 %v2626_v45, %v5377_v20  ;;  %v2764_v36 = vmax.f32 %v2732_v35, 0.0  ;;  %v2465_v14 = vpop.f32.mrf.mxu1 }
 0x6da   : > { %v3901_v41 = vpop.f32.mrf.mxu0 }
 0x6db   : > { %v2767_v59 = vmax.f32 %v2735_v6, 0.0  ;;  %v2733_v50 = vadd.f32 %v5390_v60, %v2627_v48  ;;  %v2648_v29 = vadd.f32 %v3901_v41, %v5379_v37 }
 0x6dc   : > { %v2639_v57 = vpop.f32.mrf.mxu0 }
 0x6dd   : > { %v3348_v7 = vpack.c.bf16 %v2767_v59, %v2766_v52  ;;  %v2765_v19 = vmax.f32 %v2733_v50, 0.0  ;;  %v2640_v12 = vadd.f32 %v2639_v57, %v5381_v8  ;;  %v2738_v20 = vadd.f32 %v5390_v60, %v2648_v29 }
 0x6de   : > { %v3902_v58 = vpop.f32.mrf.mxu0 }
 0x6df   : > { %3404 = vst [vmem:[%s5404_s18 + $0x28] sm:$0xff] %v3348_v7   ;;  %v3343_v30 = vpack.c.bf16 %v2765_v19, %v2764_v36  ;;  %v2651_v3 = vadd.f32 %v3902_v58, %v5383_v56  ;;  %v2736_v37 = vadd.f32 %v5390_v60, %v2640_v12  ;;  %v2770_v18 = vmax.f32 %v2738_v20, 0.0  ;;  %v3865_v56 = vpop.f32.mrf.mxu1 }
 0x6e0   : > { %v2642_v22 = vpop.f32.mrf.mxu0 }
 0x6e1   : > { %3403 = vst [vmem:[%s5404_s18 + $0x20] sm:$0xff] %v3343_v30   ;;  %v2739_v11 = vadd.f32 %v5390_v60, %v2651_v3  ;;  %v2643_v17 = vadd.f32 %v2642_v22, %v5385_v63  ;;  %v2768_v33 = vmax.f32 %v2736_v37, 0.0  ;;  %v2478_v44 = vpop.f32.mrf.mxu1 }
 0x6e2   : > { %v3905_v39 = vpop.f32.mrf.mxu0 }
 0x6e3   : > { %v2771_v8 = vmax.f32 %v2739_v11, 0.0  ;;  %v2737_v61 = vadd.f32 %v5390_v60, %v2643_v17  ;;  %v2664_v31 = vadd.f32 %v3905_v39, %v5392_v54 }
 0x6e4   : > { %v2655_v62 = vpop.f32.mrf.mxu0 }
 0x6e5   : > { %v3358_v43 = vpack.c.bf16 %v2771_v8, %v2770_v18  ;;  %v2769_v21 = vmax.f32 %v2737_v61, 0.0  ;;  %v2656_v24 = vadd.f32 %v2655_v62, %v5395_v10  ;;  %v2742_v63 = vadd.f32 %v5390_v60, %v2664_v31 }
 0x6e6   : > { %v3906_v16 = vpop.f32.mrf.mxu0 }
 0x6e7   : > { %3406 = vst [vmem:[%s5404_s18 + $0x38] sm:$0xff] %v3358_v43   ;;  %v3353_v53 = vpack.c.bf16 %v2769_v21, %v2768_v33  ;;  %v2667_v25 = vadd.f32 %v3906_v16, %v5400_v5  ;;  %v2740_v54 = vadd.f32 %v5390_v60, %v2656_v24  ;;  %v2774_v1 = vmax.f32 %v2742_v63, 0.0  ;;  %v3866_v5 = vpop.f32.mrf.mxu1 }
 0x6e8   : > { %v2658_v28 = vpop.f32.mrf.mxu0 }
 0x6e9   : > { %3405 = vst [vmem:[%s5404_s18 + $0x30] sm:$0xff] %v3353_v53   ;;  %v2743_v9 = vadd.f32 %v5390_v60, %v2667_v25  ;;  %v2659_v55 = vadd.f32 %v2658_v28, %v5408_v38  ;;  %v2772_v46 = vmax.f32 %v2740_v54, 0.0  ;;  %v2481_v26 = vpop.f32.mrf.mxu1 }
 0x6ea   : > { %v3909_v40 = vpop.f32.mrf.mxu0 }
 0x6eb   : > { %v2775_v10 = vmax.f32 %v2743_v9, 0.0  ;;  %v2741_v2 = vadd.f32 %v5390_v60, %v2659_v55  ;;  %v2680_v32 = vadd.f32 %v3909_v40, %v5414_v23  ;;  %v3869_v59 = vpop.f32.mrf.mxu1 }
 0x6ec   : > { %v2671_v13 = vpop.f32.mrf.mxu0 }
 0x6ed   : > { %v3368_v47 = vpack.c.bf16 %v2775_v10, %v2774_v1  ;;  %v2773_v34 = vmax.f32 %v2741_v2, 0.0  ;;  %v2672_v0 = vadd.f32 %v2671_v13, %v2462_v4  ;;  %v2746_v42 = vadd.f32 %v5390_v60, %v2680_v32  ;;  %v2494_v30 = vpop.f32.mrf.mxu1 }
 0x6ee   : > { %v3910_v49 = vpop.f32.mrf.mxu0 }
 0x6ef   : > { %3408 = vst [vmem:[%s5404_s18 + $0x48] sm:$0xff] %v3368_v47   ;;  %v3363_v15 = vpack.c.bf16 %v2773_v34, %v2772_v46  ;;  %v2683_v38 = vadd.f32 %v3910_v49, %v3862_v51  ;;  %v2744_v45 = vadd.f32 %v5390_v60, %v2672_v0  ;;  %v2778_v48 = vmax.f32 %v2746_v42, 0.0  ;;  %v3870_v8 = vpop.f32.mrf.mxu1 }
 0x6f0   : > { %v2674_v27 = vpop.f32.mrf.mxu0 }
 0x6f1   : > { %3407 = vst [vmem:[%s5404_s18 + $0x40] sm:$0xff] %v3363_v15   ;;  %v2747_v23 = vadd.f32 %v5390_v60, %v2683_v38  ;;  %v2675_v35 = vadd.f32 %v2674_v27, %v2465_v14  ;;  %v2776_v29 = vmax.f32 %v2744_v45, 0.0  ;;  %v2497_v53 = vpop.f32.mrf.mxu1 }
 0x6f2   : > { %v3913_v6 = vpop.f32.mrf.mxu0 }
 0x6f3   : > { %v2779_v41 = vmax.f32 %v2747_v23, 0.0  ;;  %v2745_v4 = vadd.f32 %v5390_v60, %v2675_v35  ;;  %v2696_v52 = vadd.f32 %v3913_v6, %v3865_v56 }
 0x6f4   : > { %v2687_v50 = vpop.f32.mrf.mxu0 }
 0x6f5   : > { %v3378_v57 = vpack.c.bf16 %v2779_v41, %v2778_v48  ;;  %v2777_v51 = vmax.f32 %v2745_v4, 0.0  ;;  %v2688_v36 = vadd.f32 %v2687_v50, %v2478_v44  ;;  %v2750_v12 = vadd.f32 %v5390_v60, %v2696_v52 }
 0x6f6   : > { %v3914_v7 = vpop.f32.mrf.mxu0 }
 0x6f7   : > { %3410 = vst [vmem:[%s5404_s18 + $0x58] sm:$0xff] %v3378_v57   ;;  %v3373_v19 = vpack.c.bf16 %v2777_v51, %v2776_v29  ;;  %v2699_v58 = vadd.f32 %v3914_v7, %v3866_v5  ;;  %v2748_v3 = vadd.f32 %v5390_v60, %v2688_v36  ;;  %v2782_v11 = vmax.f32 %v2750_v12, 0.0 }
 0x6f8   : > { %v2690_v20 = vpop.f32.mrf.mxu0 }
 0x6f9   : > { %3409 = vst [vmem:[%s5404_s18 + $0x50] sm:$0xff] %v3373_v19   ;;  %v2751_v22 = vadd.f32 %v5390_v60, %v2699_v58  ;;  %v2691_v14 = vadd.f32 %v2690_v20, %v2481_v26  ;;  %v2780_v31 = vmax.f32 %v2748_v3, 0.0 }
 0x6fa   : > { %v3917_v37 = vpop.f32.mrf.mxu0 }
 0x6fb   : > { %v2783_v17 = vmax.f32 %v2751_v22, 0.0  ;;  %v2749_v39 = vadd.f32 %v5390_v60, %v2691_v14  ;;  %v2712_v18 = vadd.f32 %v3917_v37, %v3869_v59 }
 0x6fc   : > { %v2703_v61 = vpop.f32.mrf.mxu0 }
 0x6fd   : > { %v3388_v62 = vpack.c.bf16 %v2783_v17, %v2782_v11  ;;  %v2781_v56 = vmax.f32 %v2749_v39, 0.0  ;;  %v2704_v33 = vadd.f32 %v2703_v61, %v2494_v30  ;;  %v2754_v24 = vadd.f32 %v5390_v60, %v2712_v18 }
 0x6fe   : > { %v3918_v43 = vpop.f32.mrf.mxu0 }
 0x6ff   : > { %3412 = vst [vmem:[%s5404_s18 + $0x68] sm:$0xff] %v3388_v62   ;;  %v3383_v21 = vpack.c.bf16 %v2781_v56, %v2780_v31  ;;  %v2715_v16 = vadd.f32 %v3918_v43, %v3870_v8  ;;  %v2752_v25 = vadd.f32 %v5390_v60, %v2704_v33  ;;  %v2786_v54 = vmax.f32 %v2754_v24, 0.0 }
 0x700   : > { %v2706_v63 = vpop.f32.mrf.mxu0 }
 0x701   : > { %3411 = vst [vmem:[%s5404_s18 + $0x60] sm:$0xff] %v3383_v21   ;;  %v2755_v28 = vadd.f32 %v5390_v60, %v2715_v16  ;;  %v2707_v44 = vadd.f32 %v2706_v63, %v2497_v53  ;;  %v2784_v40 = vmax.f32 %v2752_v25, 0.0 }
 0x703   : > { %v2787_v9 = vmax.f32 %v2755_v28, 0.0  ;;  %v2753_v55 = vadd.f32 %v5390_v60, %v2707_v44 }
 0x705   : > { %v3398_v1 = vpack.c.bf16 %v2787_v9, %v2786_v54  ;;  %v2785_v10 = vmax.f32 %v2753_v55, 0.0 }
 0x707   : > { %3414 = vst [vmem:[%s5404_s18 + $0x78] sm:$0xff] %v3398_v1   ;;  %v3393_v2 = vpack.c.bf16 %v2785_v10, %v2784_v40 }
 0x709   : > { %3413 = vst [vmem:[%s5404_s18 + $0x70] sm:$0xff] %v3393_v2  }
 0x70a   : > { %4505 = shalt.err (!%p4502_p3)
}
 0x70b   : > { %s4506_s21 = scalar_lea.hbm %s5467_s27, 2048  ;;  %s4510_s19 = scalar_lea.hbm %s5584_s16, 4096 }
 0x70c   : > { %p4507_p9 = scmp.ne.s32.totalorder %s5467_s27, %s4506_s21  ;;  %p4511_p1 = scmp.lt.s32.totalorder %s5467_s27, %s5584_s16 }
 0x70d   : > { %p4512_p4 = scmp.lt.s32.totalorder %s4510_s19, %s4506_s21 }
 0x70e   : > { %p4508_p12 = pnand %p4507_p9, %p4749_p13 }
 0x70f   : > { %p4513_p5 = por %p4512_p4, %p4511_p1 }
 0x710   : > { %p4509_p0 = pneg %p4508_p12 }
 0x712   : > { %p4514_p11 = pnand %p4513_p5, %p4509_p0 }
 0x714   : > { %4517 = shalt.err (!%p4514_p11)
}
 0x715   : > { %s4601_s12 = smov 64   ;;  %s4602_s28 = smov 4  }
 0x716   : > { %3961 = dma.vmem_to_hbm [thread:$0]  (%p4749_p13), %s5469_s3, 2048, %s5467_s27, %s2949_s29, %s4601_s12, %s4601_s12, %s4602_s28  }
 0x717 PF: > { %s5585_s18 = sld [smem:[#allocation23_spill]] }
 0x718   : > { %s5586_s14 = sld [smem:[#allocation30_spill]] }
 0x719   : > { %s5587_s17 = sld [smem:[#allocation26_spill]] }
 0x71d   : > { %s2979_s24 = sand.u32 1, %s5585_s18  }
 0x71e   : > { %p5588_p8 = scmp.ne.s32.totalorder %s5586_s14, 0  ;;  %s2980_s1 = scalar_lea.sflag [#allocation4], %s2979_s24 }
 0x71f   : > { %p5589_p6 = scmp.ge.s32.totalorder %s5587_s17, 2 }
 0x721   : > { %p3990_p10 = pnand %p5589_p6, %p5588_p8 }
 0x723   : > { %p3991_p2 = pneg %p3990_p10 }
 0x725   : > { %4563 = dma.done.wait (%p3991_p2), %s2980_s1, 2048  }
 0x726   : > { %4565 = vsyncadd (%p3991_p2), %s2980_s1, 4294965248  ;;  %s31_s14 = sadd.s32 1, %s5587_s17   ;;  %s5590_s5 = sld [smem:[#allocation24_spill]] }
 0x727   : > { %p28_p7 = scmp.ge.s32.totalorder %s31_s14, 4   ;;  %s5591_s11 = sld [smem:[#allocation29_spill]] }
 0x728   : > { %s5592_s22 = sld [smem:[#allocation27_spill]]  ;;  %s5593_s30 = smov %s4572_s10 }
 0x729   : > { %s5595_s12 = smov %s4584_s13 }
 0x72a   :  { %30 = sbr.rel (!%p28_p7) target bundleno = 17 (0x11), region = 145 }
 0x72c   : > { %s5594_s10 = smov %s5590_s5 }
 0x72e   : > { %s5596_s13 = smov %s5592_s22 }
 0x72f   :  { %2985 = vsyncpa [#allocation3], 1 }
 0x730   :  { %2987 = vsyncpa [#allocation3 + $0x1], 1 }
 0x731   :  { %2988 = vsyncpa [#allocation6], 1 }
 0x732   :  { %2990 = vsyncpa [#allocation6 + $0x1], 1 }
 0x733   :  { %2991 = vsyncpa [#allocation9], 1 }
 0x734   :  { %2992 = vsyncpa [#allocation12], 1 }
 0x735   :  { %2993 = vsyncpa [#allocation15], 1 }
 0x736   :  { %2994 = vsyncpa [#allocation4], 1 }
 0x737   :  { %2996 = vsyncpa [#allocation4 + $0x1], 1 }

</bundles_post_ra>
